<compile_context>
chip_gen: v7x
topology: tpu7x:2x2x1
jax: 0.10.0
libtpu: 0.0.40
codegen_flags: <defaults>
</compile_context>

<pallas_src>
import jax
import jax.numpy as jnp
from jax.experimental import pallas as pl
from jax.experimental.pallas import tpu as pltpu

H1 = 256
H2 = 128
OUT = 1


def _round_up(x, m):
    return ((x + m - 1) // m) * m


def _tpu_vmem_capacity_bytes():
    try:
        info = pltpu.get_tpu_info()
        cap = int(getattr(info, "vmem_capacity_bytes", 0))
        if cap > 0:
            return cap
    except Exception:
        pass
    return 64 << 20  # conservative fallback (v7x per-TC VMEM)


def _num_tensorcores():
    try:
        kind = jax.devices()[0].device_kind.lower()
    except Exception:
        kind = ""
    return 2 if "v7" in kind else 1


def _mlp_kernel(x_ref, w1_ref, b1_ref, w2_ref, b2_ref, w3_ref, b3_ref,
                o_ref, acc_ref):
    k = pl.program_id(1)

    # Zero the layer-1 accumulator at the start of each batch tile's K loop.
    @pl.when(k == 0)
    def _():
        acc_ref[...] = jnp.zeros_like(acc_ref)

    # Layer 1 partial product: bf16 x-tile @ bf16 W1-tile, f32 accumulation.
    acc_ref[...] += jnp.dot(x_ref[...], w1_ref[...],
                            preferred_element_type=jnp.float32)

    # Epilogue on the last K step: bias + ReLU, layer 2, layer 3, store.
    @pl.when(k == pl.num_programs(1) - 1)
    def _():
        h1 = jnp.maximum(acc_ref[...] + b1_ref[...], 0.0)          # (tile_b, 256)
        # Dropout(0.2) == identity in eval mode.
        h2 = jnp.dot(h1, w2_ref[...], preferred_element_type=jnp.float32)
        h2 = jnp.maximum(h2 + b2_ref[...], 0.0)                    # (tile_b, 128)
        # Layer 3 (128 -> 1): VPU multiply + lane reduction (no N=1 MXU shape);
        # emit lane-dense so the writeback is an unmasked 128-lane store.
        out = jnp.sum(h2 * w3_ref[...], axis=-1) + b3_ref[0]       # (tile_b,)
        o_ref[...] = out[None, :].astype(o_ref.dtype)              # (1, tile_b)


def tcga_forward(x, w1, b1, w2, b2, w3, b3, *, tile_b=None, tile_k=None):
    """Fused TCGAModel forward (eval semantics). x: [B, D] f32 -> [B, 1] f32."""
    B, D = x.shape
    assert w1.shape == (D, H1) and w2.shape == (H1, H2) and w3.shape == (H2, OUT)

    vmem_cap = max(_tpu_vmem_capacity_bytes(), 32 << 20)
    num_tc = _num_tensorcores()

    # ---- Reduction (feature) tile: big, to amortize per-grid-step overhead
    # and make each DMA multi-MB. 128-MiB parts (v5e/v6e) take 4096; 64-MiB
    # v7x stays at 2048.
    if tile_k is None:
        tile_k = 4096 if vmem_cap >= (100 << 20) else 2048
    tile_k = int(max(128, min(_round_up(int(tile_k), 128), _round_up(D, 128))))

    # ---- Batch tile: as few batch blocks as possible (1 per TensorCore) so
    # W1 is streamed from HBM only num_tc times; v7x keeps >=2 blocks so its
    # second TensorCore gets work. Capped by a per-generation VMEM budget.
    budget = int(0.55 * vmem_cap)
    w1_tile_bytes = 2 * 2 * tile_k * H1                    # bf16, double-buffered
    resident_bytes = 2 * 4 * (H1 * H2 + H1 + 2 * H2) + (1 << 20)
    per_row_bytes = 2 * 2 * tile_k + 4 * H1 + 2 * 4        # x tiles + acc + out
    max_rows = (budget - w1_tile_bytes - resident_bytes) // per_row_bytes
    max_rows = max(128, (max_rows // 128) * 128)

    if tile_b is None:
        tgt = pl.cdiv(B, num_tc)
        tile_b = _round_up(tgt, 256) if tgt > 128 else 128
    tile_b = _round_up(int(tile_b), 128)
    tile_b = int(max(128, min(tile_b, _round_up(B, 128), 2048, max_rows)))

    num_b = pl.cdiv(B, tile_b)
    Bp = num_b * tile_b
    Dp = _round_up(D, tile_k)
    num_k = Dp // tile_k

    # ---- bf16 streams for layer 1; zero-pad so every block is fully valid
    # (padded zeros contribute exactly zero; padded batch rows are sliced off).
    x_bf = x.astype(jnp.bfloat16)
    w1_bf = w1.astype(jnp.bfloat16)
    if Bp != B or Dp != D:
        x_bf = jnp.pad(x_bf, ((0, Bp - B), (0, Dp - D)))
    if Dp != D:
        w1_bf = jnp.pad(w1_bf, ((0, Dp - D), (0, 0)))

    b1r = b1.reshape(1, H1).astype(jnp.float32)
    b2r = b2.reshape(1, H2).astype(jnp.float32)
    w3r = w3.reshape(1, H2).astype(jnp.float32)   # (128, 1) -> (1, 128) row
    b3s = b3.reshape(OUT).astype(jnp.float32)     # SMEM scalar
    w2f = w2.astype(jnp.float32)                  # small & resident; kept f32

    # ---- Generation-aware VMEM limit: estimate + headroom, capped at 75% of
    # physical VMEM (64 MiB on v7x, 128 MiB on v5e/v6e).
    vmem_est = (2 * 2 * tile_b * tile_k          # x tiles (bf16, double-buffered)
                + 2 * 2 * tile_k * H1            # W1 tiles (bf16, double-buffered)
                + 4 * tile_b * H1                # f32 accumulator scratch
                + 2 * 4 * H1 * H2                # W2 (resident)
                + 2 * 4 * (H1 + 2 * H2)          # b1 / b2 / w3 rows
                + 2 * 4 * tile_b)                # output block
    vmem_limit = int(min(max(vmem_est + (8 << 20), 32 << 20), (3 * vmem_cap) // 4))
    vmem_limit = int(min(max(vmem_limit, vmem_est + (2 << 20)), vmem_cap))

    cost = pl.CostEstimate(
        flops=int(2 * Bp * (Dp * H1 + H1 * H2 + H2)),
        transcendentals=0,
        bytes_accessed=int(2 * Bp * Dp + 2 * num_b * Dp * H1
                           + 4 * (H1 * H2 + H1 + 2 * H2 + OUT) + 4 * Bp),
    )

    out2d = pl.pallas_call(
        _mlp_kernel,
        out_shape=jax.ShapeDtypeStruct((1, Bp), jnp.float32),
        grid_spec=pltpu.PrefetchScalarGridSpec(
            num_scalar_prefetch=0,
            grid=(num_b, num_k),                                       # K last
            in_specs=[
                pl.BlockSpec((tile_b, tile_k), lambda i, k: (i, k)),   # x (bf16)
                pl.BlockSpec((tile_k, H1),     lambda i, k: (k, 0)),   # W1 (bf16)
                pl.BlockSpec((1, H1),          lambda i, k: (0, 0)),   # b1 (resident)
                pl.BlockSpec((H1, H2),         lambda i, k: (0, 0)),   # W2 (resident)
                pl.BlockSpec((1, H2),          lambda i, k: (0, 0)),   # b2 (resident)
                pl.BlockSpec((1, H2),          lambda i, k: (0, 0)),   # w3 row (resident)
                pl.BlockSpec(memory_space=pltpu.MemorySpace.SMEM),     # b3 scalar
            ],
            out_specs=pl.BlockSpec((1, tile_b), lambda i, k: (0, i)),  # lane-dense
            scratch_shapes=[pltpu.VMEM((tile_b, H1), jnp.float32)],
        ),
        compiler_params=pltpu.CompilerParams(
            dimension_semantics=("parallel", "arbitrary"),
            vmem_limit_bytes=vmem_limit,
        ),
        cost_estimate=cost,
    )(x_bf, w1_bf, b1r, w2f, b2r, w3r, b3s)

    return out2d[0, :B].reshape(B, OUT)


def init_params(key, input_dim):
    """Deterministic init matching TCGAModel's nn.Linear layers.

    Weights are stored as [in, out] (transpose of PyTorch's [out, in]);
    uniform(-1/sqrt(fan_in), 1/sqrt(fan_in)) like the PyTorch default.
    """
    k1, k2, k3, k4, k5, k6 = jax.random.split(key, 6)

    def lin(kw, kb, fan_in, fan_out):
        bound = 1.0 / jnp.sqrt(fan_in)
        w = jax.random.uniform(kw, (fan_in, fan_out), jnp.float32, -bound, bound)
        b = jax.random.uniform(kb, (fan_out,), jnp.float32, -bound, bound)
        return w, b

    w1, b1 = lin(k1, k2, input_dim, H1)
    w2, b2 = lin(k3, k4, H1, H2)
    w3, b3 = lin(k5, k6, H2, OUT)
    return w1, b1, w2, b2, w3, b3


if __name__ == "__main__":
    key = jax.random.PRNGKey(0)
    kx, kp = jax.random.split(key)

    B = 300          # ragged batch tail -> exercises zero-padded batch tiling
    INPUT_DIM = 520  # not a multiple of 128 -> exercises zero-padded K tiling

    x = jax.random.normal(kx, (B, INPUT_DIM), dtype=jnp.float32)
    w1, b1, w2, b2, w3, b3 = init_params(kp, INPUT_DIM)

    # Pure-JAX references (eval-mode forward).
    hp = jax.lax.Precision.HIGHEST
    ref = jnp.maximum(jnp.dot(x, w1, precision=hp) + b1, 0.0)
    ref = jnp.maximum(jnp.dot(ref, w2, precision=hp) + b2, 0.0)
    ref = jnp.dot(ref, w3, precision=hp) + b3

    # Reference with the same bf16 rounding of the layer-1 operands (checks the
    # kernel logic tightly; the bf16 cast itself is the deliberate numerics change).
    xb = x.astype(jnp.bfloat16).astype(jnp.float32)
    w1b = w1.astype(jnp.bfloat16).astype(jnp.float32)
    ref_bf = jnp.maximum(jnp.dot(xb, w1b, precision=hp) + b1, 0.0)
    ref_bf = jnp.maximum(jnp.dot(ref_bf, w2, precision=hp) + b2, 0.0)
    ref_bf = jnp.dot(ref_bf, w3, precision=hp) + b3

    # (1) Small explicit tiles: multi-step (batch, K) grid with padded K blocks
    #     and a ragged batch tail. (2) Auto-selected, generation-aware tiles.
    out_small = tcga_forward(x, w1, b1, w2, b2, w3, b3, tile_b=128, tile_k=256)
    out_auto = tcga_forward(x, w1, b1, w2, b2, w3, b3)
    out_small, out_auto = jax.block_until_ready((out_small, out_auto))

    for out in (out_small, out_auto):
        assert out.shape == (B, 1)
        assert jnp.allclose(out, ref_bf, atol=5e-3, rtol=5e-3), (
            float(jnp.max(jnp.abs(out - ref_bf))))
        assert jnp.allclose(out, ref, atol=5e-2, rtol=5e-2), (
            float(jnp.max(jnp.abs(out - ref))))

    print("KERNEL_OK")
</pallas_src>

<mosaic_0001>
module attributes {stable_mosaic.version = 11 : i64} {
  func.func @_mlp_kernel(%arg0: i32, %arg1: i32, %arg2: memref<128x256xbf16, #tpu.memory_space<vmem>>, %arg3: memref<256x256xbf16, #tpu.memory_space<vmem>>, %arg4: memref<1x256xf32, #tpu.memory_space<vmem>>, %arg5: memref<256x128xf32, #tpu.memory_space<vmem>>, %arg6: memref<1x128xf32, #tpu.memory_space<vmem>>, %arg7: memref<1x128xf32, #tpu.memory_space<vmem>>, %arg8: memref<1xf32, #tpu.memory_space<smem>>, %arg9: memref<1x128xf32, #tpu.memory_space<vmem>>, %arg10: memref<128x256xf32, #tpu.memory_space<vmem>>) attributes {dimension_semantics = [#tpu.dimension_semantics<parallel>, #tpu.dimension_semantics<arbitrary>], iteration_bounds = array<i64: 3, 3>, scalar_prefetch = 0 : i64, scratch_operands = 1 : i64, tpu.core_type = #tpu.core_type<tc>, window_params = [{transform_indices = @transform_0, window_bounds = array<i64: 128, 256>}, {transform_indices = @transform_1, window_bounds = array<i64: 256, 256>}, {pipeline_mode = #tpu.pipeline_mode<synchronous>, transform_indices = @transform_2, window_bounds = array<i64: 1, 256>}, {pipeline_mode = #tpu.pipeline_mode<synchronous>, transform_indices = @transform_3, window_bounds = array<i64: 256, 128>}, {pipeline_mode = #tpu.pipeline_mode<synchronous>, transform_indices = @transform_4, window_bounds = array<i64: 1, 128>}, {pipeline_mode = #tpu.pipeline_mode<synchronous>, transform_indices = @transform_5, window_bounds = array<i64: 1, 128>}, {transform_indices = @transform_6, window_bounds = array<i64: 1>}, {transform_indices = @transform_7, window_bounds = array<i64: 1, 128>}]} {
    %c0_i32 = arith.constant 0 : i32
    %0 = arith.cmpi eq, %arg1, %c0_i32 : i32
    %1 = arith.extui %0 : i1 to i32
    %c0_i32_0 = arith.constant 0 : i32
    %2 = arith.cmpi ne, %1, %c0_i32_0 : i32
    scf.if %2 {
      %cst_9 = arith.constant 0.000000e+00 : f32
      %12 = vector.broadcast %cst_9 : f32 to vector<128x256xf32>
      %c0_10 = arith.constant 0 : index
      %c0_11 = arith.constant 0 : index
      %13 = vector.load %arg10[%c0_10, %c0_11] : memref<128x256xf32, #tpu.memory_space<vmem>>, vector<128x256xf32>
      tpu.vector_store %arg10[%c0_10, %c0_11], %12 {strides = array<i32>} : memref<128x256xf32, #tpu.memory_space<vmem>>, vector<128x256xf32>,
    } else {
    }
    %c0 = arith.constant 0 : index
    %c0_1 = arith.constant 0 : index
    %3 = vector.load %arg10[%c0, %c0_1] : memref<128x256xf32, #tpu.memory_space<vmem>>, vector<128x256xf32>
    %c0_2 = arith.constant 0 : index
    %c0_3 = arith.constant 0 : index
    %4 = vector.load %arg2[%c0_2, %c0_3] : memref<128x256xbf16, #tpu.memory_space<vmem>>, vector<128x256xbf16>
    %c0_4 = arith.constant 0 : index
    %c0_5 = arith.constant 0 : index
    %5 = vector.load %arg3[%c0_4, %c0_5] : memref<256x256xbf16, #tpu.memory_space<vmem>>, vector<256x256xbf16>
    %cst = arith.constant dense<0.000000e+00> : vector<128x256xf32>
    %6 = tpu.matmul %4, %5, %cst {dimension_numbers = #tpu.dot_dimension_numbers<[1], [0], [0], [1], [0, 0, 1, 1], [], []>} : vector<128x256xbf16>, vector<256x256xbf16>, vector<128x256xf32> -> vector<128x256xf32>
    %7 = arith.addf %3, %6 : vector<128x256xf32>
    %c0_6 = arith.constant 0 : index
    %c0_7 = arith.constant 0 : index
    %8 = vector.load %arg10[%c0_6, %c0_7] : memref<128x256xf32, #tpu.memory_space<vmem>>, vector<128x256xf32>
    tpu.vector_store %arg10[%c0_6, %c0_7], %7 {strides = array<i32>} : memref<128x256xf32, #tpu.memory_space<vmem>>, vector<128x256xf32>,
    %c2_i32 = arith.constant 2 : i32
    %9 = arith.cmpi eq, %arg1, %c2_i32 : i32
    %10 = arith.extui %9 : i1 to i32
    %c0_i32_8 = arith.constant 0 : i32
    %11 = arith.cmpi ne, %10, %c0_i32_8 : i32
    scf.if %11 {
      %c0_9 = arith.constant 0 : index
      %c0_10 = arith.constant 0 : index
      %12 = vector.load %arg10[%c0_9, %c0_10] : memref<128x256xf32, #tpu.memory_space<vmem>>, vector<128x256xf32>
      %c0_11 = arith.constant 0 : index
      %c0_12 = arith.constant 0 : index
      %13 = vector.load %arg4[%c0_11, %c0_12] : memref<1x256xf32, #tpu.memory_space<vmem>>, vector<1x256xf32>
      %14 = vector.broadcast %13 : vector<1x256xf32> to vector<128x256xf32>
      %15 = arith.addf %12, %14 : vector<128x256xf32>
      %cst_13 = arith.constant 0.000000e+00 : f32
      %16 = vector.broadcast %cst_13 : f32 to vector<128x256xf32>
      %17 = arith.maximumf %15, %16 : vector<128x256xf32>
      %c0_14 = arith.constant 0 : index
      %c0_15 = arith.constant 0 : index
      %18 = vector.load %arg5[%c0_14, %c0_15] : memref<256x128xf32, #tpu.memory_space<vmem>>, vector<256x128xf32>
      %cst_16 = arith.constant dense<0.000000e+00> : vector<128x128xf32>
      %19 = tpu.matmul %17, %18, %cst_16 {dimension_numbers = #tpu.dot_dimension_numbers<[1], [0], [0], [1], [0, 0, 1, 1], [], []>} : vector<128x256xf32>, vector<256x128xf32>, vector<128x128xf32> -> vector<128x128xf32>
      %c0_17 = arith.constant 0 : index
      %c0_18 = arith.constant 0 : index
      %20 = vector.load %arg6[%c0_17, %c0_18] : memref<1x128xf32, #tpu.memory_space<vmem>>, vector<1x128xf32>
      %21 = vector.broadcast %20 : vector<1x128xf32> to vector<128x128xf32>
      %22 = arith.addf %19, %21 : vector<128x128xf32>
      %cst_19 = arith.constant 0.000000e+00 : f32
      %23 = vector.broadcast %cst_19 : f32 to vector<128x128xf32>
      %24 = arith.maximumf %22, %23 : vector<128x128xf32>
      %c0_20 = arith.constant 0 : index
      %c0_21 = arith.constant 0 : index
      %25 = vector.load %arg7[%c0_20, %c0_21] : memref<1x128xf32, #tpu.memory_space<vmem>>, vector<1x128xf32>
      %26 = vector.broadcast %25 : vector<1x128xf32> to vector<128x128xf32>
      %27 = arith.mulf %24, %26 : vector<128x128xf32>
      %cst_22 = arith.constant dense<0.000000e+00> : vector<128xf32>
      %28 = vector.multi_reduction <add>, %27, %cst_22 [1] : vector<128x128xf32> to vector<128xf32>
      %c0_23 = arith.constant 0 : index
      %29 = memref.load %arg8[%c0_23] : memref<1xf32, #tpu.memory_space<smem>>
      %30 = vector.broadcast %29 : f32 to vector<128xf32>
      %31 = arith.addf %28, %30 : vector<128xf32>
      %32 = vector.shape_cast %31 : vector<128xf32> to vector<1x128xf32>
      %c0_24 = arith.constant 0 : index
      %c0_25 = arith.constant 0 : index
      %33 = vector.load %arg9[%c0_24, %c0_25] : memref<1x128xf32, #tpu.memory_space<vmem>>, vector<1x128xf32>
      tpu.vector_store %arg9[%c0_24, %c0_25], %32 {strides = array<i32>} : memref<1x128xf32, #tpu.memory_space<vmem>>, vector<1x128xf32>,
    } else {
    }
    return
  }
  func.func @transform_0(%arg0: i32, %arg1: i32) -> (i32, i32) {
    %c0_i32 = arith.constant 0 : i32
    return %arg0, %arg1 : i32, i32
  }
  func.func @transform_1(%arg0: i32, %arg1: i32) -> (i32, i32) {
    %c0_i32 = arith.constant 0 : i32
    %c0_i32_0 = arith.constant 0 : i32
    return %arg1, %c0_i32 : i32, i32
  }
  func.func @transform_2(%arg0: i32, %arg1: i32) -> (i32, i32) {
    %c0_i32 = arith.constant 0 : i32
    %c0_i32_0 = arith.constant 0 : i32
    %c0_i32_1 = arith.constant 0 : i32
    return %c0_i32, %c0_i32_0 : i32, i32
  }
  func.func @transform_3(%arg0: i32, %arg1: i32) -> (i32, i32) {
    %c0_i32 = arith.constant 0 : i32
    %c0_i32_0 = arith.constant 0 : i32
    %c0_i32_1 = arith.constant 0 : i32
    return %c0_i32, %c0_i32_0 : i32, i32
  }
  func.func @transform_4(%arg0: i32, %arg1: i32) -> (i32, i32) {
    %c0_i32 = arith.constant 0 : i32
    %c0_i32_0 = arith.constant 0 : i32
    %c0_i32_1 = arith.constant 0 : i32
    return %c0_i32, %c0_i32_0 : i32, i32
  }
  func.func @transform_5(%arg0: i32, %arg1: i32) -> (i32, i32) {
    %c0_i32 = arith.constant 0 : i32
    %c0_i32_0 = arith.constant 0 : i32
    %c0_i32_1 = arith.constant 0 : i32
    return %c0_i32, %c0_i32_0 : i32, i32
  }
  func.func @transform_6(%arg0: i32, %arg1: i32) -> i32 {
    %c0_i32 = arith.constant 0 : i32
    %c0_i32_0 = arith.constant 0 : i32
    return %c0_i32 : i32
  }
  func.func @transform_7(%arg0: i32, %arg1: i32) -> (i32, i32) {
    %c0_i32 = arith.constant 0 : i32
    %c0_i32_0 = arith.constant 0 : i32
    return %c0_i32, %arg0 : i32, i32
  }
}

</mosaic_0001>

<bundles_post_ra>
// kernel: tpu_custom_call.1
= control target key start
LH: loop header
LB: loop body
LE: loop exit
PB: predicated region body
PF: predicated region fallthrough
CT: control target
= control target key end

     0   :  { %s2885_s0 = inlined_call_operand.hbm [shape: bf16[384,768], index: 0, kind: input, shape index: {}]   ;;  %s2886_s1 = inlined_call_operand.hbm [shape: bf16[768,256], index: 1, kind: input, shape index: {}]   ;;  %s2887_s2 = inlined_call_operand.vmem [shape: f32[1,256], index: 2, kind: input, shape index: {}]   ;;  %s2888_s3 = inlined_call_operand.hbm [shape: f32[256,128], index: 3, kind: input, shape index: {}]   ;;  %s2889_s4 = inlined_call_operand.vmem [shape: f32[1,128], index: 4, kind: input, shape index: {}]   ;;  %s2890_s5 = inlined_call_operand.vmem [shape: f32[1,128], index: 5, kind: input, shape index: {}]   ;;  %s2891_s6 = inlined_call_operand.<no memory space> [shape: f32[1], index: 6, kind: input, shape index: {}]   ;;  %s2892_s7 = inlined_call_operand.hbm [shape: f32[1,384], index: 7, kind: output, shape index: {}]  }
   0x1   :  { %2912 = sst [smem:[#allocation23_spill]] %s2885_s0 }
   0x2   :  { %2913 = sst [smem:[#allocation24_spill]] %s2887_s2 }
   0x3   :  { %2914 = sst [smem:[#allocation25_spill]] %s2888_s3 }
   0x4   :  { %2915 = sst [smem:[#allocation26_spill]] %s2889_s4 }
   0x5   :  { %2916 = sst [smem:[#allocation27_spill]] %s2890_s5 }
   0x6   :  { %2917 = sst [smem:[#allocation28_spill]] %s2892_s7 }
   0x7   :  { %12 = sst [smem:[#allocation3]] %s2891_s6 }
   0x8   :  { %13 = vsyncpa [#allocation5], 0 }
   0x9   :  { %15 = vsyncpa [#allocation5 + $0x1], 0 }
   0xa   :  { %16 = vsyncpa [#allocation8], 0 }
   0xb   :  { %18 = vsyncpa [#allocation8 + $0x1], 0 }
   0xc   :  { %19 = vsyncpa [#allocation6], 0 }
   0xd   :  { %21 = vsyncpa [#allocation6 + $0x1], 0  ;;  %s2293_s26 = smov 0   ;;  %s2295_s27 = smov 0  }
   0xe   :  { %s2297_s28 = smov 0   ;;  %s2299_s29 = smov 0  }
   0xf   :  { %s2301_s30 = smov 0   ;;  %s2303_s8 = smov 0  }
  0x10   :  { %s2305_s9 = smov 0   ;;  %s2307_s6 = smov 0  }
  0x11   :  { %s2309_s10 = smov 0   ;;  %s2311_s11 = smov 0  }
  0x12   :  { %s2313_s12 = smov 0   ;;  %s2315_s13 = smov 0  }
  0x13   :  { %s2317_s14 = smov 0   ;;  %s2319_s15 = smov 0  }
  0x14 LB: > { %2918 = sst [smem:[#allocation15_spill]] %s2188_s26  ;;  %s2360_s16 = sadd.s32 4294967295, %s2240_s15   ;;  %s2240_s15 = sphi %s2319_s15, %s27_s15   ;;  %s2236_s14 = sphi %s2317_s14, %s2975_s14   ;;  %s2232_s13 = sphi %s2315_s13, %s2974_s13   ;;  %s2228_s12 = sphi %s2313_s12, %s2973_s12   ;;  %s2224_s11 = sphi %s2311_s11, %s2972_s11   ;;  %s2220_s10 = sphi %s2309_s10, %s2971_s10   ;;  %s2216_s6 = sphi %s2307_s6, %s2970_s6   ;;  %s2212_s9 = sphi %s2305_s9, %s2969_s9   ;;  %s2208_s8 = sphi %s2303_s8, %s2968_s8   ;;  %s2204_s30 = sphi %s2301_s30, %s2967_s30   ;;  %s2200_s29 = sphi %s2299_s29, %s2966_s29   ;;  %s2196_s28 = sphi %s2297_s28, %s2965_s28   ;;  %s2192_s27 = sphi %s2295_s27, %s2964_s27   ;;  %s2188_s26 = sphi %s2293_s26, %s2963_s26  }
  0x15   : > { %2919 = sst [smem:[#allocation16_spill]] %s2224_s11  ;;  %s1545_s17 = sadd.s32 4294967294, %s2240_s15  }
  0x16   : > { %2920 = sst [smem:[#allocation17_spill]] %s2228_s12  ;;  %p61_p0 = scmp.ne.s32.totalorder %s2216_s6, %s2212_s9 }
  0x17   : > { %2921 = sst [smem:[#allocation18_spill]] %s2236_s14  ;;  %p2898_p1 = scmp.eq.s32.totalorder %s2360_s16, 0 }
  0x18   : > { %p87_p2 = scmp.ne.s32.totalorder %s2204_s30, %s2200_s29  ;;  %p215_p4 = scmp.ne.s32.totalorder %s2196_s28, %s2192_s27 }
  0x19   : > { %p2369_p3 = por %p2898_p1, %p61_p0  ;;  %p216_p6 = scmp.eq.s32.totalorder %s2360_s16, 8 }
  0x1a   : > { %p2377_p5 = por %p87_p2, %p2898_p1  ;;  %p221_p7 = scmp.ne.s32.totalorder %s2192_s27, %s2188_s26 }
  0x1b   : > { %s2922_s19 = scalar_select %p2369_p3, 1, 0 }
  0x1c   : > { %s2923_s20 = scalar_select %p2377_p5, 1, 0 }
  0x1d   : > { %p222_p8 = scmp.eq.s32.totalorder %s1545_s17, 8  ;;  %p2384_p9 = por %p216_p6, %p215_p4 }
  0x1e   : > { %p1546_p10 = scmp.ge.s32.totalorder %s2240_s15, 1  ;;  %p229_p12 = scmp.lt.s32.totalorder %s2240_s15, 10 }
  0x1f   : > { %s2924_s21 = scalar_select %p2384_p9, 1, 0 }
  0x20   : > { %p2389_p11 = por %p222_p8, %p221_p7  ;;  %p2394_p13 = pnand %p1546_p10, %p229_p12 }
  0x21   : > { %2925 = sst [smem:[#allocation19_spill]] %s2924_s21  ;;  %s2242_s24 = smov [#allocation9]  }
  0x22   : > { %s2926_s22 = scalar_select %p2389_p11, 1, 0 }
  0x23   : > { %s2928_s23 = scalar_select %p2394_p13, 1, 0 }
  0x24   : > { %2927 = sst [smem:[#allocation20_spill]] %s2926_s22  ;;  %s244_s25 = sshll.u32 %s2242_s24, 4  ;;  %s245_s25 = int_to_ptr.vmem [resolvable:$true] %s244_s25 }
  0x25   : > { %p1790_p0 = pneg %p2394_p13  ;;  %s2930_s3 = sld [smem:[#allocation25_spill]] }
  0x27   : > { %p2402_p2 = pnand %p1790_p0, %p2898_p1 }
  0x29   : > { %p2000_p6 = pneg %p2402_p2 }
  0x2b   : > { %s1998_s18 = scalar_lea.hbm %s2930_s3, 4096 }
  0x2c   : > { %p1999_p4 = scmp.ne.s32.totalorder %s2930_s3, %s1998_s18  ;;  %p2005_p10 = scmp.lt.u32.totalorder %s1998_s18, %s2930_s3 }
  0x2e   : > { %p2001_p7 = pnand %p2000_p6, %p1999_p4 }
  0x30   : > { %p2002_p8 = pneg %p2001_p7 }
  0x32   : > { %p2007_p12 = pnand %p2005_p10, %p2002_p8 }
  0x34   : > { %2010 = shalt.err (!%p2007_p12)
}
  0x35   : > { %s2011_s21 = scalar_lea.vmem %s245_s25, 4096  ;;  %p2019_p9 = scmp.lt.s32.totalorder %s245_s25, %s245_s25 }
  0x36   : > { %p2012_p0 = scmp.ne.s32.totalorder %s245_s25, %s2011_s21  ;;  %p2020_p5 = scmp.lt.s32.totalorder %s2011_s21, %s2011_s21 }
  0x38   : > { %p2014_p1 = pnand %p2012_p0, %p2000_p6  ;;  %p2021_p3 = por %p2020_p5, %p2019_p9 }
  0x3a   : > { %p2015_p11 = pneg %p2014_p1 }
  0x3c   : > { %p2022_p13 = pnand %p2021_p3, %p2015_p11 }
  0x3e   : > { %2025 = shalt.err (!%p2022_p13)
}
  0x3f   : > { %s2903_s26 = smov 128   ;;  %s2905_s7 = smov 8  }
  0x40   : > { %1793 = dma.hbm_to_vmem [thread:$0]  (!%p2402_p2), %s2930_s3, 4096, %s245_s25, [#allocation8], %s2903_s26, %s2903_s26, %s2905_s7  }
  0x41   : > { %s36_s22 = sadd.s32 1, %s2232_s13  ;;  %s39_s9 = sadd.s32 1, %s2236_s14 }
  0x42   : > { %p37_p1 = scmp.ge.s32.totalorder %s36_s22, 3  ;;  %s48_s17 = sadd.s32 1, %s2220_s10 }
  0x43   : > { %p55_p3 = scmp.ne.s32.totalorder %s2220_s10, %s2216_s6  ;;  %p2910_p5 = scmp.eq.s32.totalorder %s2240_s15, 0 }
  0x44   : > { %s2977_s22 = smov (%p37_p1, %s36_s22), 0  ;;  %s2979_s9 = smov (!%p37_p1, %s39_s9), %s2236_s14 }
  0x45   : > { %2931 = sst [smem:[#allocation21_spill]] %s2977_s22  ;;  %s2435_s29 = ssub.s32 %s2232_s13, %s2977_s22 }
  0x46   : > { %p41_p9 = scmp.ge.s32.totalorder %s2979_s9, 3  ;;  %p72_p11 = scmp.eq.s32.totalorder %s2435_s29, 0 }
  0x47   : > { %p2441_p13 = por %p2910_p5, %p55_p3  ;;  %p2909_p2 = scmp.lt.s32.totalorder %s2240_s15, 9 }
  0x48   : > { %s2981_s9 = smov (%p41_p9, %s2979_s9), 0  ;;  %s267_s24 = sand.u32 1, %s2220_s10  }
  0x49   : > { %2933 = sst [smem:[#allocation22_spill]] %s2981_s9  ;;  %s1551_s18 = sshll.u32 %s2232_s13, 1 }
  0x4a   : > { %s43_s21 = ssub.s32 %s2236_s14, %s2981_s9  ;;  %s1549_s7 = sshll.u32 %s267_s24, 7 }
  0x4b   : > { %s45_s26 = sor.u32 %s2435_s29, %s43_s21  ;;  %p203_p4 = scmp.eq.s32.totalorder %s43_s21, 0 }
  0x4c   : > { %p46_p6 = scmp.eq.s32.totalorder %s45_s26, 0  ;;  %s2934_s3 = sadd.s32 1, %s2196_s28 }
  0x4d   : > { %s2456_s22 = scalar_select %p203_p4, %s2196_s28, %s2934_s3  }
  0x4e   : > { %s2459_s12 = scalar_select %p46_p6, %s2220_s10, %s48_s17  }
  0x4f   : > { %s1779_s5 = smul.u32 96, %s2236_s14  ;;  %s271_s4 = scalar_lea.vmem [#allocation4], %s1549_s7 }
  0x50   : > { %s281_s2 = sshll.u32 %s271_s4, 4  ;;  %p2466_p7 = pnand %p2909_p2, %p2441_p13  ;;  %s2470_s2 = int_to_ptr.vmem [resolvable:$true] %s281_s2 }
  0x51   : > { %s278_s9 = sadd.s32 %s1779_s5, %s1551_s18  ;;  %s2936_s0 = sld [smem:[#allocation23_spill]] }
  0x52   : > { %s1553_s26 = sshll.u32 %s278_s9, 6  ;;  %s2477_s4 = scalar_lea.sflag [#allocation5], %s267_s24 }
  0x53   : > { %p2028_p10 = pneg %p2466_p7 }
  0x57   : > { %s2475_s17 = scalar_lea.hbm %s2936_s0, %s1553_s26  ;;  %s2031_s25 = scalar_lea.hbm %s2936_s0, 18432 }
  0x58   : > { %s2026_s7 = scalar_lea.hbm %s2475_s17, 2048  ;;  %p2032_p1 = scmp.lt.u32.totalorder %s2475_s17, %s2936_s0 }
  0x59   : > { %p2027_p8 = scmp.ne.s32.totalorder %s2475_s17, %s2026_s7  ;;  %p2033_p3 = scmp.lt.u32.totalorder %s2031_s25, %s2026_s7 }
  0x5a   : > { %p2035_p13 = scmp.lt.u32.totalorder %s2026_s7, %s2475_s17 }
  0x5b   : > { %p2029_p12 = pnand %p2028_p10, %p2027_p8  ;;  %p2034_p9 = por %p2033_p3, %p2032_p1 }
  0x5d   : > { %p2030_p0 = pneg %p2029_p12  ;;  %p2036_p4 = por %p2035_p13, %p2034_p9 }
  0x5f   : > { %p2037_p6 = pnand %p2036_p4, %p2030_p0 }
  0x61   : > { %2040 = shalt.err (!%p2037_p6)
}
  0x62   : > { %s2041_s24 = scalar_lea.vmem %s2470_s2, 2048  ;;  %s2245_s21 = smov [#allocation4]  }
  0x63   : > { %p2042_p8 = scmp.ne.s32.totalorder %s2470_s2, %s2041_s24  ;;  %s2046_s3 = sshll.u32 %s2245_s21, 4  ;;  %s2047_s3 = int_to_ptr.vmem [resolvable:$false] %s2046_s3 }
  0x64   : > { %s2048_s5 = scalar_lea.vmem %s2047_s3, 4096  ;;  %p2049_p5 = scmp.lt.s32.totalorder %s2470_s2, %s2047_s3 }
  0x65   : > { %p2044_p12 = pnand %p2042_p8, %p2028_p10  ;;  %p2050_p1 = scmp.lt.s32.totalorder %s2048_s5, %s2041_s24 }
  0x67   : > { %p2045_p2 = pneg %p2044_p12  ;;  %p2051_p3 = por %p2050_p1, %p2049_p5 }
  0x69   : > { %p2052_p9 = pnand %p2051_p3, %p2045_p2 }
  0x6b   : > { %2055 = shalt.err (!%p2052_p9)
}
  0x6c   : > { %s2246_s7 = smov 384   ;;  %s2937_s9 = smov 8  }
  0x6d   : > { %s2938_s25 = smov 128   ;;  %s291_s18 = sand.u32 1, %s2240_s15  }
  0x6e   : > { %1797 = dma.hbm_to_vmem [thread:$0]  (!%p2466_p7), %s2475_s17, 2048, %s2470_s2, %s2477_s4, %s2246_s7, %s2938_s25, %s2937_s9  }
  0x6f   : > { %s74_s26 = sadd.s32 1, %s2208_s8  ;;  %p81_p5 = scmp.ne.s32.totalorder %s2208_s8, %s2204_s30 }
  0x70   : > { %s2514_s11 = scalar_select %p72_p11, %s2208_s8, %s74_s26  }
  0x71   : > { %p2939_p2 = scmp.eq.s32.totalorder %s2240_s15, 0  ;;  %s293_s24 = sand.u32 1, %s2208_s8  }
  0x72   : > { %s1554_s21 = sshll.u32 %s293_s24, 8  ;;  %s1618_s3 = sshll.u32 %s2232_s13, 12 }
  0x73   : > { %p83_p10 = por %p81_p5, %p2939_p2  ;;  %s2523_s14 = scalar_lea.hbm %s2886_s1, %s1618_s3 }
  0x74   : > { %s295_s2 = scalar_lea.vmem [#allocation7], %s1554_s21  ;;  %p2940_p7 = scmp.lt.s32.totalorder %s2240_s15, 9 }
  0x75   : > { %s303_s17 = sshll.u32 %s295_s2, 4  ;;  %s2533_s4 = scalar_lea.sflag [#allocation8], %s291_s18  ;;  %s2531_s17 = int_to_ptr.vmem [resolvable:$true] %s303_s17 }
  0x76   : > { %p2527_p0 = pnand %p2940_p7, %p83_p10  ;;  %s2056_s0 = scalar_lea.hbm %s2523_s14, 4096 }
  0x77   : > { %p2057_p11 = scmp.ne.s32.totalorder %s2523_s14, %s2056_s0  ;;  %s2061_s24 = scalar_lea.hbm %s2886_s1, 12288 }
  0x78   : > { %p2058_p13 = pneg %p2527_p0  ;;  %p2062_p8 = scmp.lt.u32.totalorder %s2523_s14, %s2886_s1 }
  0x79   : > { %p2063_p12 = scmp.lt.u32.totalorder %s2061_s24, %s2056_s0  ;;  %p2065_p3 = scmp.lt.u32.totalorder %s2056_s0, %s2523_s14 }
  0x7a   : > { %p2059_p4 = pnand %p2058_p13, %p2057_p11 }
  0x7b   : > { %p2064_p1 = por %p2063_p12, %p2062_p8 }
  0x7c   : > { %p2060_p6 = pneg %p2059_p4 }
  0x7d   : > { %p2066_p9 = por %p2065_p3, %p2064_p1 }
  0x7f   : > { %p2067_p5 = pnand %p2066_p9, %p2060_p6 }
  0x81   : > { %2070 = shalt.err (!%p2067_p5)
}
  0x82   : > { %s2071_s18 = scalar_lea.vmem %s2531_s17, 4096  ;;  %s2247_s5 = smov [#allocation7]  }
  0x83   : > { %p2072_p2 = scmp.ne.s32.totalorder %s2531_s17, %s2071_s18  ;;  %s2076_s2 = sshll.u32 %s2247_s5, 4  ;;  %s2077_s2 = int_to_ptr.vmem [resolvable:$false] %s2076_s2 }
  0x84   : > { %s2078_s7 = scalar_lea.vmem %s2077_s2, 8192  ;;  %p2079_p11 = scmp.lt.s32.totalorder %s2531_s17, %s2077_s2 }
  0x85   : > { %p2074_p10 = pnand %p2072_p2, %p2058_p13  ;;  %p2080_p4 = scmp.lt.s32.totalorder %s2078_s7, %s2071_s18 }
  0x87   : > { %p2075_p7 = pneg %p2074_p10  ;;  %p2081_p8 = por %p2080_p4, %p2079_p11 }
  0x89   : > { %p2082_p12 = pnand %p2081_p8, %p2075_p7 }
  0x8b   : > { %2085 = shalt.err (!%p2082_p12)
}
  0x8c   : > { %1800 = dma.hbm_to_vmem [thread:$0]  (!%p2527_p0), %s2523_s14, 4096, %s2531_s17, %s2533_s4, %s2938_s25, %s2938_s25, %s2937_s9  }
  0x8d   : > { %p2942_p13 = scmp.ne.s32.totalorder %s2928_s23, 0 }
  0x8e   : > { %s317_s0 = sand.u32 (!%p2942_p13), 1, %s2216_s6   ;;  %p2943_p6 = scmp.ne.s32.totalorder (!%p2942_p13), %s2922_s19, 0 }
  0x8f   : > { %315 = sbr.rel (%p2942_p13) target bundleno = 937 (0x3a9), region = 48  ;;  %s1559_s26 = sshll.u32 (!%p2942_p13), %s317_s0, 7 }
  0x90   : > { %s318_s24 = scalar_lea.sflag (!%p2942_p13), [#allocation5], %s317_s0  ;;  %s2567_s21 = scalar_lea.vmem (!%p2942_p13), [#allocation4], %s1559_s26 }
  0x96   : > { %2171 = dma.done.wait (%p2943_p6), %s318_s24, 2048  }
  0x97   : > { %2173 = vsyncadd (%p2943_p6), %s318_s24, 4294965248  ;;  %s326_s29 = sand.u32 1, %s2360_s16   ;;  %s328_s14 = sand.u32 1, %s2204_s30  }
  0x98   : > { %s1560_s9 = sshll.u32 %s328_s14, 8  ;;  %s327_s23 = scalar_lea.sflag [#allocation8], %s326_s29 }
  0x99   : > { %s2575_s25 = scalar_lea.vmem [#allocation7], %s1560_s9  ;;  %p2944_p0 = scmp.ne.s32.totalorder %s2923_s20, 0 }
  0x9b   : > { %2175 = dma.done.wait (%p2944_p0), %s327_s23, 4096  }
  0x9c   : > { %2177 = vsyncadd (%p2944_p0), %s327_s23, 4294963200  ;;  %p2945_p1 = scmp.eq.s32.totalorder %s2360_s16, 0 }
  0x9e   : > { %2179 = dma.done.wait (%p2945_p1), [#allocation8], 4096   ;;  %p2946_p3 = pmov %p2945_p1 }
  0x9f   : > { %s367_s19 = sand.u32 1, %s2192_s27   ;;  %s2947_s4 = sld [smem:[#allocation16_spill]] }
  0xa0   : > { %2181 = vsyncadd (%p2946_p3), [#allocation8], 4294963200  ;;  %s2588_s17 = scalar_lea.vmem [#allocation10], %s367_s19 }
  0xa5   : > { %p1562_p9 = scmp.ne.s32.totalorder %s2947_s4, 0 }
  0xa6   : > { %v2248_v0 = vmov (!%p1562_p9), 0.0  }
  0xa7   : > { %375 = sbr.rel (%p1562_p9) target bundleno = 183 (0xb7), region = 64  ;;  %376 = vst [vmem:[#allocation2] sm:$0xff] (!%p1562_p9), %v2248_v0  ;;  %377 = vst [vmem:[#allocation2 + $0x8] sm:$0xff] (!%p1562_p9), %v2248_v0 }
  0xa8   : > { %378 = vst [vmem:[#allocation2 + $0x10] sm:$0xff] (!%p1562_p9), %v2248_v0  ;;  %379 = vst [vmem:[#allocation2 + $0x18] sm:$0xff] (!%p1562_p9), %v2248_v0 }
  0xa9   : > { %380 = vst [vmem:[#allocation2 + $0x20] sm:$0xff] (!%p1562_p9), %v2248_v0  ;;  %381 = vst [vmem:[#allocation2 + $0x28] sm:$0xff] (!%p1562_p9), %v2248_v0 }
  0xaa   : > { %382 = vst [vmem:[#allocation2 + $0x30] sm:$0xff] (!%p1562_p9), %v2248_v0  ;;  %383 = vst [vmem:[#allocation2 + $0x38] sm:$0xff] (!%p1562_p9), %v2248_v0 }
  0xab   : > { %384 = vst [vmem:[#allocation2 + $0x40] sm:$0xff] (!%p1562_p9), %v2248_v0  ;;  %385 = vst [vmem:[#allocation2 + $0x48] sm:$0xff] (!%p1562_p9), %v2248_v0 }
  0xac   : > { %386 = vst [vmem:[#allocation2 + $0x50] sm:$0xff] (!%p1562_p9), %v2248_v0  ;;  %387 = vst [vmem:[#allocation2 + $0x58] sm:$0xff] (!%p1562_p9), %v2248_v0 }
  0xad   : > { %388 = vst [vmem:[#allocation2 + $0x60] sm:$0xff] (!%p1562_p9), %v2248_v0  ;;  %389 = vst [vmem:[#allocation2 + $0x68] sm:$0xff] (!%p1562_p9), %v2248_v0 }
  0xae   : > { %390 = vst [vmem:[#allocation2 + $0x70] sm:$0xff] %v2248_v0  ;;  %391 = vst [vmem:[#allocation2 + $0x78] sm:$0xff] %v2248_v0 }
  0xaf   : > { %392 = vst [vmem:[#allocation2 + $0x80] sm:$0xff] %v2248_v0  ;;  %393 = vst [vmem:[#allocation2 + $0x88] sm:$0xff] %v2248_v0 }
  0xb0   : > { %394 = vst [vmem:[#allocation2 + $0x90] sm:$0xff] %v2248_v0  ;;  %395 = vst [vmem:[#allocation2 + $0x98] sm:$0xff] %v2248_v0 }
  0xb1   : > { %396 = vst [vmem:[#allocation2 + $0xa0] sm:$0xff] %v2248_v0  ;;  %397 = vst [vmem:[#allocation2 + $0xa8] sm:$0xff] %v2248_v0 }
  0xb2   : > { %398 = vst [vmem:[#allocation2 + $0xb0] sm:$0xff] %v2248_v0  ;;  %399 = vst [vmem:[#allocation2 + $0xb8] sm:$0xff] %v2248_v0 }
  0xb3   : > { %400 = vst [vmem:[#allocation2 + $0xc0] sm:$0xff] %v2248_v0  ;;  %401 = vst [vmem:[#allocation2 + $0xc8] sm:$0xff] %v2248_v0 }
  0xb4   : > { %402 = vst [vmem:[#allocation2 + $0xd0] sm:$0xff] %v2248_v0  ;;  %403 = vst [vmem:[#allocation2 + $0xd8] sm:$0xff] %v2248_v0 }
  0xb5   : > { %404 = vst [vmem:[#allocation2 + $0xe0] sm:$0xff] %v2248_v0  ;;  %405 = vst [vmem:[#allocation2 + $0xe8] sm:$0xff] %v2248_v0 }
  0xb6   : > { %406 = vst [vmem:[#allocation2 + $0xf0] sm:$0xff] %v2248_v0  ;;  %407 = vst [vmem:[#allocation2 + $0xf8] sm:$0xff] %v2248_v0 }
  0xb7 PF: > { %v1926_v1 = vld [vmem:[%s2575_s25 + $0x4] ss:$8 sps:$4 sm:$0xff]   ;;  %v1928_v2 = vld [vmem:[%s2575_s25] ss:$8 sps:$4 sm:$0xff]   ;;  %v1929_v3 = vld [vmem:[%s2575_s25 + $0x14] ss:$8 sps:$4 sm:$0xff]  }
  0xb8   : > { %728 = vmatprep.subr.bf16.mxu0 %v1926_v1  ;;  %1731 = vmatprep.subr.bf16.mxu1 %v1926_v1  ;;  %v1931_v4 = vld [vmem:[%s2575_s25 + $0x10] ss:$8 sps:$4 sm:$0xff]   ;;  %v1932_v5 = vld [vmem:[%s2575_s25 + $0x24] ss:$8 sps:$4 sm:$0xff]   ;;  %v1934_v6 = vld [vmem:[%s2575_s25 + $0x20] ss:$8 sps:$4 sm:$0xff]  }
  0xb9   : > { %729 = vmatpush1.bf16.msra.mxu0 %v1928_v2  ;;  %1747 = vmatpush1.bf16.msra.mxu1 %v1928_v2  ;;  %v1935_v7 = vld [vmem:[%s2575_s25 + $0x34] ss:$8 sps:$4 sm:$0xff]   ;;  %v1937_v8 = vld [vmem:[%s2575_s25 + $0x30] ss:$8 sps:$4 sm:$0xff]   ;;  %v1938_v9 = vld [vmem:[%s2575_s25 + $0x44] ss:$8 sps:$4 sm:$0xff]  }
  0xba   : > { %730 = vmatprep.subr.bf16.mxu0 %v1929_v3  ;;  %1732 = vmatprep.subr.bf16.mxu1 %v1929_v3  ;;  %v1940_v10 = vld [vmem:[%s2575_s25 + $0x40] ss:$8 sps:$4 sm:$0xff]   ;;  %v1941_v11 = vld [vmem:[%s2575_s25 + $0x54] ss:$8 sps:$4 sm:$0xff]   ;;  %v1943_v12 = vld [vmem:[%s2575_s25 + $0x50] ss:$8 sps:$4 sm:$0xff]  }
  0xbb   : > { %v1944_v13 = vld [vmem:[%s2575_s25 + $0x64] ss:$8 sps:$4 sm:$0xff]   ;;  %v1946_v15 = vld [vmem:[%s2575_s25 + $0x60] ss:$8 sps:$4 sm:$0xff]   ;;  %v1947_v17 = vld [vmem:[%s2575_s25 + $0x74] ss:$8 sps:$4 sm:$0xff]  }
  0xbc   : > { %v1976_v14 = vld [vmem:[%s2567_s21 + $0x4] ss:$8 sps:$4 sm:$0xff]   ;;  %v1949_v18 = vld [vmem:[%s2575_s25 + $0x70] ss:$8 sps:$4 sm:$0xff]   ;;  %v1952_v20 = vld [vmem:[%s2575_s25 + $0x80] ss:$8 sps:$4 sm:$0xff]  }
  0xbd   : > { %731 = vmatpush1.bf16.msra.mxu0 %v1931_v4  ;;  %1748 = vmatpush1.bf16.msra.mxu1 %v1931_v4  ;;  %v1979_v16 = vld [vmem:[%s2567_s21 + $0x44] ss:$8 sps:$4 sm:$0xff]   ;;  %v1953_v21 = vld [vmem:[%s2575_s25 + $0x94] ss:$8 sps:$4 sm:$0xff]   ;;  %v1955_v22 = vld [vmem:[%s2575_s25 + $0x90] ss:$8 sps:$4 sm:$0xff]  }
  0xbe   : > { %732 = vmatprep.subr.bf16.mxu0 %v1932_v5  ;;  %1733 = vmatprep.subr.bf16.mxu1 %v1932_v5  ;;  %v1950_v19 = vld [vmem:[%s2575_s25 + $0x84] ss:$8 sps:$4 sm:$0xff]   ;;  %v1958_v24 = vld [vmem:[%s2575_s25 + $0xa0] ss:$8 sps:$4 sm:$0xff]   ;;  %v1959_v25 = vld [vmem:[%s2575_s25 + $0xb4] ss:$8 sps:$4 sm:$0xff]  }
  0xbf   : > { %760 = vmatprep.mubr.bf16.mxu0 %v1976_v14  ;;  %800 = vmatprep.mubr.bf16.mxu1 %v1979_v16  ;;  %v1956_v23 = vld [vmem:[%s2575_s25 + $0xa4] ss:$8 sps:$4 sm:$0xff]   ;;  %v1961_v26 = vld [vmem:[%s2575_s25 + $0xb0] ss:$8 sps:$4 sm:$0xff]   ;;  %v1964_v28 = vld [vmem:[%s2575_s25 + $0xc0] ss:$8 sps:$4 sm:$0xff]  }
  0xc0   : > { %v1962_v27 = vld [vmem:[%s2575_s25 + $0xc4] ss:$8 sps:$4 sm:$0xff]   ;;  %v1965_v29 = vld [vmem:[%s2575_s25 + $0xd4] ss:$8 sps:$4 sm:$0xff]   ;;  %v1967_v30 = vld [vmem:[%s2575_s25 + $0xd0] ss:$8 sps:$4 sm:$0xff]  }
  0xc1   : > { %733 = vmatpush1.bf16.msra.mxu0 %v1934_v6  ;;  %1749 = vmatpush1.bf16.msra.mxu1 %v1934_v6  ;;  %v1968_v31 = vld [vmem:[%s2575_s25 + $0xe4] ss:$8 sps:$4 sm:$0xff]   ;;  %v1970_v32 = vld [vmem:[%s2575_s25 + $0xe0] ss:$8 sps:$4 sm:$0xff]   ;;  %v1971_v33 = vld [vmem:[%s2575_s25 + $0xf4] ss:$8 sps:$4 sm:$0xff]  }
  0xc2   : > { %734 = vmatprep.subr.bf16.mxu0 %v1935_v7  ;;  %1734 = vmatprep.subr.bf16.mxu1 %v1935_v7  ;;  %v1973_v34 = vld [vmem:[%s2575_s25 + $0xf0] ss:$8 sps:$4 sm:$0xff]   ;;  %v1974_v35 = vld [vmem:[%s2567_s21] ss:$8 sps:$4 sm:$0xff]   ;;  %v1980_v37 = vld [vmem:[%s2567_s21 + $0x14] ss:$8 sps:$4 sm:$0xff]  }
  0xc3   : > { %v1977_v36 = vld [vmem:[%s2567_s21 + $0x40] ss:$8 sps:$4 sm:$0xff]   ;;  %v1982_v38 = vld [vmem:[%s2567_s21 + $0x54] ss:$8 sps:$4 sm:$0xff]   ;;  %v1984_v39 = vld [vmem:[%s2567_s21 + $0x10] ss:$8 sps:$4 sm:$0xff]  }
  0xc4   : > { %v1985_v40 = vld [vmem:[%s2567_s21 + $0x50] ss:$8 sps:$4 sm:$0xff]   ;;  %v1986_v41 = vld [vmem:[%s2567_s21 + $0x24] ss:$8 sps:$4 sm:$0xff]   ;;  %v1990_v43 = vld [vmem:[%s2567_s21 + $0x20] ss:$8 sps:$4 sm:$0xff]  }
  0xc5   : > { %735 = vmatpush1.bf16.msra.mxu0 %v1937_v8  ;;  %1750 = vmatpush1.bf16.msra.mxu1 %v1937_v8  ;;  %v1988_v42 = vld [vmem:[%s2567_s21 + $0x64] ss:$8 sps:$4 sm:$0xff]   ;;  %v1991_v44 = vld [vmem:[%s2567_s21 + $0x60] ss:$8 sps:$4 sm:$0xff]   ;;  %v1992_v45 = vld [vmem:[%s2567_s21 + $0x34] ss:$8 sps:$4 sm:$0xff]  }
  0xc6   : > { %736 = vmatprep.subr.bf16.mxu0 %v1938_v9  ;;  %1735 = vmatprep.subr.bf16.mxu1 %v1938_v9  ;;  %v1994_v46 = vld [vmem:[%s2567_s21 + $0x74] ss:$8 sps:$4 sm:$0xff]   ;;  %v1996_v47 = vld [vmem:[%s2567_s21 + $0x30] ss:$8 sps:$4 sm:$0xff]   ;;  %v408_v49 = vld [vmem:[#allocation2] sm:$0xff]  ;;  %s2948_s16 = sld [smem:[#allocation16_spill]] }
  0xc7   : > { %v1997_v48 = vld [vmem:[%s2567_s21 + $0x70] ss:$8 sps:$4 sm:$0xff]   ;;  %v424_v50 = vld [vmem:[#allocation2 + $0x80] sm:$0xff]  ;;  %v409_v51 = vld [vmem:[#allocation2 + $0x8] sm:$0xff] }
  0xc8   : > { %v425_v52 = vld [vmem:[#allocation2 + $0x88] sm:$0xff]  ;;  %v410_v55 = vld [vmem:[#allocation2 + $0x10] sm:$0xff]  ;;  %v411_v61 = vld [vmem:[#allocation2 + $0x18] sm:$0xff] }
  0xc9   : > { %737 = vmatpush1.bf16.msra.mxu0 %v1940_v10  ;;  %1751 = vmatpush1.bf16.msra.mxu1 %v1940_v10  ;;  %v426_v56 = vld [vmem:[#allocation2 + $0x90] sm:$0xff]  ;;  %v427_v62 = vld [vmem:[#allocation2 + $0x98] sm:$0xff]  ;;  %v412_v9 = vld [vmem:[#allocation2 + $0x20] sm:$0xff] }
  0xca   : > { %738 = vmatprep.subr.bf16.mxu0 %v1941_v11  ;;  %1736 = vmatprep.subr.bf16.mxu1 %v1941_v11  ;;  %v428_v10 = vld [vmem:[#allocation2 + $0xa0] sm:$0xff]  ;;  %v413_v11 = vld [vmem:[#allocation2 + $0x28] sm:$0xff]  ;;  %v430_v16 = vld [vmem:[#allocation2 + $0xb0] sm:$0xff] }
  0xcc   : > { %p1611_p5 = scmp.ne.s32.totalorder %s2948_s16, 2 }
  0xcd   : > { %739 = vmatpush1.bf16.msra.mxu0 %v1943_v12  ;;  %1752 = vmatpush1.bf16.msra.mxu1 %v1943_v12  ;;  %v429_v12 = vld [vmem:[#allocation2 + $0xa8] sm:$0xff]  ;;  %s2949_s18 = sld [smem:[#allocation24_spill]] (!%p1611_p5)  ;;  %s2950_s7 = sld [smem:[#allocation26_spill]] (!%p1611_p5)  ;;  %vm1317_vm0 = vcmask (!%p1611_p5), 130112   ;;  %vm1324_vm1 = vcmask (!%p1611_p5), 195712   ;;  %vm1331_vm2 = vcmask (!%p1611_p5), 261312  }
  0xce   : > { %740 = vmatprep.subr.bf16.mxu0 %v1944_v13  ;;  %1737 = vmatprep.subr.bf16.mxu1 %v1944_v13  ;;  %s2951_s24 = sld [smem:[#allocation27_spill]] (!%p1611_p5)  ;;  %s1272_s21 = sld [smem:[#allocation3]] (!%p1611_p5)  ;;  %vm1338_vm3 = vcmask (!%p1611_p5), 326912   ;;  %vm1345_vm4 = vcmask (!%p1611_p5), 392512   ;;  %vm1352_vm5 = vcmask (!%p1611_p5), 458112   ;;  %vm1359_vm6 = vcmask (!%p1611_p5), 523712  }
  0xcf   : > { %vm1366_vm7 = vcmask (!%p1611_p5), 589312   ;;  %vm1373_vm8 = vcmask (!%p1611_p5), 654912   ;;  %vm1380_vm9 = vcmask (!%p1611_p5), 720512   ;;  %vm1387_vm10 = vcmask (!%p1611_p5), 786112  }
  0xd0   : > { %vm1394_vm11 = vcmask (!%p1611_p5), 851712   ;;  %vm1401_vm12 = vcmask (!%p1611_p5), 917312   ;;  %vm1408_vm13 = vcmask (!%p1611_p5), 982912   ;;  %vm1415_vm14 = vcmask (!%p1611_p5), 1048512  }
  0xd1   : > { %741 = vmatpush1.bf16.msra.mxu0 %v1946_v15  ;;  %1753 = vmatpush1.bf16.msra.mxu1 %v1946_v15  ;;  %v414_v15 = vld [vmem:[#allocation2 + $0x30] sm:$0xff] }
  0xd2   : > { %742 = vmatprep.subr.bf16.mxu0 %v1947_v17  ;;  %1738 = vmatprep.subr.bf16.mxu1 %v1947_v17 }
  0xd5   : > { %743 = vmatpush1.bf16.msra.mxu0 %v1949_v18  ;;  %1754 = vmatpush1.bf16.msra.mxu1 %v1949_v18 }
  0xd6   : > { %744 = vmatprep.subr.bf16.mxu0 %v1950_v19  ;;  %1739 = vmatprep.subr.bf16.mxu1 %v1950_v19 }
  0xd9   : > { %745 = vmatpush1.bf16.msra.mxu0 %v1952_v20  ;;  %1755 = vmatpush1.bf16.msra.mxu1 %v1952_v20 }
  0xda   : > { %746 = vmatprep.subr.bf16.mxu0 %v1953_v21  ;;  %1740 = vmatprep.subr.bf16.mxu1 %v1953_v21  ;;  %v415_v21 = vld [vmem:[#allocation2 + $0x38] sm:$0xff] }
  0xdd   : > { %747 = vmatpush1.bf16.msra.mxu0 %v1955_v22  ;;  %1756 = vmatpush1.bf16.msra.mxu1 %v1955_v22  ;;  %v431_v22 = vld [vmem:[#allocation2 + $0xb8] sm:$0xff] }
  0xde   : > { %748 = vmatprep.subr.bf16.mxu0 %v1956_v23  ;;  %1741 = vmatprep.subr.bf16.mxu1 %v1956_v23 }
  0xe1   : > { %749 = vmatpush1.bf16.msra.mxu0 %v1958_v24  ;;  %1757 = vmatpush1.bf16.msra.mxu1 %v1958_v24 }
  0xe2   : > { %750 = vmatprep.subr.bf16.mxu0 %v1959_v25  ;;  %1742 = vmatprep.subr.bf16.mxu1 %v1959_v25 }
  0xe5   : > { %751 = vmatpush1.bf16.msra.mxu0 %v1961_v26  ;;  %1758 = vmatpush1.bf16.msra.mxu1 %v1961_v26 }
  0xe6   : > { %752 = vmatprep.subr.bf16.mxu0 %v1962_v27  ;;  %1743 = vmatprep.subr.bf16.mxu1 %v1962_v27 }
  0xe9   : > { %753 = vmatpush1.bf16.msra.mxu0 %v1964_v28  ;;  %1759 = vmatpush1.bf16.msra.mxu1 %v1964_v28 }
  0xea   : > { %754 = vmatprep.subr.bf16.mxu0 %v1965_v29  ;;  %1744 = vmatprep.subr.bf16.mxu1 %v1965_v29 }
  0xed   : > { %755 = vmatpush1.bf16.msra.mxu0 %v1967_v30  ;;  %1760 = vmatpush1.bf16.msra.mxu1 %v1967_v30 }
  0xee   : > { %756 = vmatprep.subr.bf16.mxu0 %v1968_v31  ;;  %1745 = vmatprep.subr.bf16.mxu1 %v1968_v31 }
  0xf1   : > { %757 = vmatpush1.bf16.msra.mxu0 %v1970_v32  ;;  %1761 = vmatpush1.bf16.msra.mxu1 %v1970_v32 }
  0xf2   : > { %758 = vmatprep.subr.bf16.mxu0 %v1971_v33  ;;  %1746 = vmatprep.subr.bf16.mxu1 %v1971_v33  ;;  %v416_v33 = vld [vmem:[#allocation2 + $0x40] sm:$0xff] }
  0xf5   : > { %759 = vmatpush1.bf16.msra.mxu0 %v1973_v34  ;;  %1762 = vmatpush1.bf16.msra.mxu1 %v1973_v34  ;;  %v432_v34 = vld [vmem:[#allocation2 + $0xc0] sm:$0xff] }
  0xf8   : > { %761 = vmatmul.mubr.bf16.vlgmr.msra.gmra.mrb[0].mxu0 %v1974_v35  ;;  %801 = vmatmul.mubr.bf16.vlgmr.msra.gmra.mrb[0].mxu1 %v1977_v36  ;;  %v417_v35 = vld [vmem:[#allocation2 + $0x48] sm:$0xff] }
  0xf9   : > { %770 = vmatprep.mubr.bf16.mxu0 %v1980_v37  ;;  %810 = vmatprep.mubr.bf16.mxu1 %v1982_v38  ;;  %v433_v36 = vld [vmem:[#allocation2 + $0xc8] sm:$0xff] }
 0x100   : > { %771 = vmatmul.mubr.bf16.gmra.mrb[4].mxu0 %v1984_v39  ;;  %811 = vmatmul.mubr.bf16.gmra.mrb[4].mxu1 %v1985_v40  ;;  %v418_v39 = vld [vmem:[#allocation2 + $0x50] sm:$0xff] }
 0x101   : > { %780 = vmatprep.mubr.bf16.mxu0 %v1986_v41  ;;  %820 = vmatprep.mubr.bf16.mxu1 %v1988_v42  ;;  %v434_v40 = vld [vmem:[#allocation2 + $0xd0] sm:$0xff] }
 0x108   : > { %781 = vmatmul.mubr.bf16.gmra.mrb[8].mxu0 %v1990_v43  ;;  %821 = vmatmul.mubr.bf16.gmra.mrb[8].mxu1 %v1991_v44 }
 0x109   : > { %790 = vmatprep.mubr.bf16.mxu0 %v1992_v45  ;;  %830 = vmatprep.mubr.bf16.mxu1 %v1994_v46  ;;  %v419_v45 = vld [vmem:[#allocation2 + $0x58] sm:$0xff] }
 0x10a   : > { %v435_v46 = vld [vmem:[#allocation2 + $0xd8] sm:$0xff] }
 0x110   : > { %791 = vmatmul.mubr.bf16.gmra.mrb[12].mxu0 %v1996_v47  ;;  %831 = vmatmul.mubr.bf16.gmra.mrb[12].mxu1 %v1997_v48 }
 0x1cb   : > { %v762_v53 = vpop.f32.mrb[0].mxu0  ;;  %v802_v54 = vpop.f32.mrb[0].mxu1 }
 0x1cc   : > { %v841_v57 = vadd.f32 %v762_v53, %v408_v49  ;;  %v857_v58 = vadd.f32 %v802_v54, %v424_v50  ;;  %v764_v59 = vpop.f32.mrb[1].mxu0  ;;  %v804_v60 = vpop.f32.mrb[1].mxu1 }
 0x1cd   : > { %v842_v63 = vadd.f32 %v764_v59, %v409_v51  ;;  %v858_v0 = vadd.f32 %v804_v60, %v425_v52  ;;  %v766_v1 = vpop.f32.mrb[2].mxu0  ;;  %v806_v2 = vpop.f32.mrb[2].mxu1  ;;  %v421_v59 = vld [vmem:[#allocation2 + $0x68] sm:$0xff] }
 0x1ce   : > { %873 = vst [vmem:[#allocation2] sm:$0xff] %v841_v57  ;;  %889 = vst [vmem:[#allocation2 + $0x80] sm:$0xff] %v857_v58  ;;  %v843_v3 = vadd.f32 %v766_v1, %v410_v55  ;;  %v859_v4 = vadd.f32 %v806_v2, %v426_v56  ;;  %v768_v5 = vpop.f32.mrb[3].mxu0  ;;  %v808_v6 = vpop.f32.mrb[3].mxu1  ;;  %v420_v57 = vld [vmem:[#allocation2 + $0x60] sm:$0xff]  ;;  %v437_v60 = vld [vmem:[#allocation2 + $0xe8] sm:$0xff] }
 0x1cf   : > { %874 = vst [vmem:[#allocation2 + $0x8] sm:$0xff] %v842_v63  ;;  %890 = vst [vmem:[#allocation2 + $0x88] sm:$0xff] %v858_v0  ;;  %v844_v7 = vadd.f32 %v768_v5, %v411_v61  ;;  %v860_v8 = vadd.f32 %v808_v6, %v427_v62  ;;  %v436_v58 = vld [vmem:[#allocation2 + $0xe0] sm:$0xff]  ;;  %v422_v63 = vld [vmem:[#allocation2 + $0x70] sm:$0xff] }
 0x1d0   : > { %875 = vst [vmem:[#allocation2 + $0x10] sm:$0xff] %v843_v3  ;;  %891 = vst [vmem:[#allocation2 + $0x90] sm:$0xff] %v859_v4  ;;  %v438_v0 = vld [vmem:[#allocation2 + $0xf0] sm:$0xff]  ;;  %v423_v5 = vld [vmem:[#allocation2 + $0x78] sm:$0xff] }
 0x1d1   : > { %876 = vst [vmem:[#allocation2 + $0x18] sm:$0xff] %v844_v7  ;;  %892 = vst [vmem:[#allocation2 + $0x98] sm:$0xff] %v860_v8  ;;  %v439_v6 = vld [vmem:[#allocation2 + $0xf8] sm:$0xff] }
 0x1d3   : > { %v772_v13 = vpop.f32.mrb[4].mxu0  ;;  %v812_v14 = vpop.f32.mrb[4].mxu1 }
 0x1d4   : > { %v845_v17 = vadd.f32 %v772_v13, %v412_v9  ;;  %v861_v18 = vadd.f32 %v812_v14, %v428_v10  ;;  %v774_v19 = vpop.f32.mrb[5].mxu0  ;;  %v814_v20 = vpop.f32.mrb[5].mxu1 }
 0x1d5   : > { %v846_v23 = vadd.f32 %v774_v19, %v413_v11  ;;  %v862_v24 = vadd.f32 %v814_v20, %v429_v12  ;;  %v776_v25 = vpop.f32.mrb[6].mxu0  ;;  %v816_v26 = vpop.f32.mrb[6].mxu1  ;;  %v1017_v19 = vld [vmem:[#allocation9] sm:$0xff] (!%p1611_p5)  ;;  %v943_v20 = vlaneseq (!%p1611_p5) }
 0x1d6   : > { %877 = vst [vmem:[#allocation2 + $0x20] sm:$0xff] %v845_v17  ;;  %893 = vst [vmem:[#allocation2 + $0xa0] sm:$0xff] %v861_v18  ;;  %v847_v27 = vadd.f32 %v776_v25, %v414_v15  ;;  %v863_v28 = vadd.f32 %v816_v26, %v430_v16  ;;  %v778_v29 = vpop.f32.mrb[7].mxu0  ;;  %v818_v30 = vpop.f32.mrb[7].mxu1  ;;  %v1033_v17 = vld [vmem:[#allocation9 + $0x80] sm:$0xff] (!%p1611_p5)  ;;  %v1034_v18 = vld [vmem:[#allocation9 + $0x88] sm:$0xff] (!%p1611_p5) }
 0x1d7   : > { %878 = vst [vmem:[#allocation2 + $0x28] sm:$0xff] %v846_v23  ;;  %894 = vst [vmem:[#allocation2 + $0xa8] sm:$0xff] %v862_v24  ;;  %v848_v31 = vadd.f32 %v778_v29, %v415_v21  ;;  %v864_v32 = vadd.f32 %v818_v30, %v431_v22  ;;  %v1699_v21 = vpack.c.bf16 (!%p1611_p5), %v1034_v18, %v1033_v17  ;;  %v1018_v22 = vld [vmem:[#allocation9 + $0x8] sm:$0xff] (!%p1611_p5)  ;;  %v1035_v23 = vld [vmem:[#allocation9 + $0x90] sm:$0xff] (!%p1611_p5) }
 0x1d8   : > { %879 = vst [vmem:[#allocation2 + $0x30] sm:$0xff] %v847_v27  ;;  %895 = vst [vmem:[#allocation2 + $0xb0] sm:$0xff] %v863_v28  ;;  %v1036_v24 = vld [vmem:[#allocation9 + $0x98] sm:$0xff] (!%p1611_p5)  ;;  %v1701_v25 = vpack.c.bf16 (!%p1611_p5), %v1018_v22, %v1017_v19  ;;  %v1019_v27 = vld [vmem:[#allocation9 + $0x10] sm:$0xff] (!%p1611_p5) }
 0x1d9   : > { %880 = vst [vmem:[#allocation2 + $0x38] sm:$0xff] %v848_v31  ;;  %896 = vst [vmem:[#allocation2 + $0xb8] sm:$0xff] %v864_v32  ;;  %v1703_v26 = vpack.c.bf16 (!%p1611_p5), %v1036_v24, %v1035_v23  ;;  %v1020_v28 = vld [vmem:[#allocation9 + $0x18] sm:$0xff] (!%p1611_p5)  ;;  %v1037_v29 = vld [vmem:[#allocation9 + $0xa0] sm:$0xff] (!%p1611_p5)  ;;  %1700 = vmatprep.subr.bf16.mxu0 (!%p1611_p5), %v1699_v21  ;;  %1763 = vmatprep.subr.bf16.mxu1 (!%p1611_p5), %v1699_v21  ;;  %v2641_v32 = vshrl.u32 (!%p1611_p5), %v943_v20, 7 }
 0x1da   : > { %v1038_v30 = vld [vmem:[#allocation9 + $0xa8] sm:$0xff] (!%p1611_p5)  ;;  %1702 = vmatpush3.bf16.msra.mxu0 (!%p1611_p5), %v1701_v25  ;;  %1771 = vmatpush3.bf16.msra.mxu1 (!%p1611_p5), %v1701_v25  ;;  %v1705_v31 = vpack.c.bf16 (!%p1611_p5), %v1020_v28, %v1019_v27  ;;  %v911_v23 = vld [vmem:[#allocation2 + $0x10] sm:$0xff] (!%p1611_p5) }
 0x1db   : > { %v782_v37 = vpop.f32.mrb[8].mxu0  ;;  %v822_v38 = vpop.f32.mrb[8].mxu1  ;;  %1704 = vmatprep.subr.bf16.mxu0 (!%p1611_p5), %v1703_v26  ;;  %1764 = vmatprep.subr.bf16.mxu1 (!%p1611_p5), %v1703_v26  ;;  %v927_v24 = vld [vmem:[#allocation2 + $0x90] sm:$0xff] (!%p1611_p5) }
 0x1dc   : > { %v849_v41 = vadd.f32 %v782_v37, %v416_v33  ;;  %v865_v42 = vadd.f32 %v822_v38, %v432_v34  ;;  %v784_v43 = vpop.f32.mrb[9].mxu0  ;;  %v824_v44 = vpop.f32.mrb[9].mxu1  ;;  %v1707_v33 = vpack.c.bf16 (!%p1611_p5), %v1038_v30, %v1037_v29  ;;  %v1021_v34 = vld [vmem:[#allocation9 + $0x20] sm:$0xff] (!%p1611_p5)  ;;  %v1040_v37 = vld [vmem:[#allocation9 + $0xb8] sm:$0xff] (!%p1611_p5) }
 0x1dd   : > { %v850_v47 = vadd.f32 %v784_v43, %v417_v35  ;;  %v866_v48 = vadd.f32 %v824_v44, %v433_v36  ;;  %v786_v49 = vpop.f32.mrb[10].mxu0  ;;  %v826_v50 = vpop.f32.mrb[10].mxu1  ;;  %v1022_v35 = vld [vmem:[#allocation9 + $0x28] sm:$0xff] (!%p1611_p5)  ;;  %v1039_v36 = vld [vmem:[#allocation9 + $0xb0] sm:$0xff] (!%p1611_p5)  ;;  %v1041_v43 = vld [vmem:[#allocation9 + $0xc0] sm:$0xff] (!%p1611_p5) }
 0x1de   : > { %881 = vst [vmem:[#allocation2 + $0x40] sm:$0xff] %v849_v41  ;;  %897 = vst [vmem:[#allocation2 + $0xc0] sm:$0xff] %v865_v42  ;;  %v851_v51 = vadd.f32 %v786_v49, %v418_v39  ;;  %v867_v52 = vadd.f32 %v826_v50, %v434_v40  ;;  %v788_v53 = vpop.f32.mrb[11].mxu0  ;;  %v828_v54 = vpop.f32.mrb[11].mxu1  ;;  %1706 = vmatpush3.bf16.msra.mxu0 (!%p1611_p5), %v1705_v31  ;;  %1772 = vmatpush3.bf16.msra.mxu1 (!%p1611_p5), %v1705_v31  ;;  %v949_v39 = vsub.s32 (!%p1611_p5), 1, %v2641_v32  ;;  %v1023_v41 = vld [vmem:[#allocation9 + $0x30] sm:$0xff] (!%p1611_p5) }
 0x1df   : > { %882 = vst [vmem:[#allocation2 + $0x48] sm:$0xff] %v850_v47  ;;  %898 = vst [vmem:[#allocation2 + $0xc8] sm:$0xff] %v866_v48  ;;  %v852_v55 = vadd.f32 %v788_v53, %v419_v45  ;;  %v868_v56 = vadd.f32 %v828_v54, %v435_v46  ;;  %v1709_v38 = vpack.c.bf16 (!%p1611_p5), %v1022_v35, %v1021_v34  ;;  %1708 = vmatprep.subr.bf16.mxu0 (!%p1611_p5), %v1707_v33  ;;  %v1024_v42 = vld [vmem:[#allocation9 + $0x38] sm:$0xff] (!%p1611_p5)  ;;  %v1042_v44 = vld [vmem:[#allocation9 + $0xc8] sm:$0xff] (!%p1611_p5) }
 0x1e0   : > { %883 = vst [vmem:[#allocation2 + $0x50] sm:$0xff] %v851_v51  ;;  %899 = vst [vmem:[#allocation2 + $0xd0] sm:$0xff] %v867_v52  ;;  %1765 = vmatprep.subr.bf16.mxu1 (!%p1611_p5), %v1707_v33  ;;  %v1711_v40 = vpack.c.bf16 (!%p1611_p5), %v1040_v37, %v1039_v36  ;;  %v910_v45 = vld [vmem:[#allocation2 + $0x8] sm:$0xff] (!%p1611_p5)  ;;  %v941_v46 = vld [vmem:[%s2949_s18] sm:$0x3] (!%p1611_p5)  ;;  %v1713_v48 = vpack.c.bf16 (!%p1611_p5), %v1024_v42, %v1023_v41  ;;  %v1715_v50 = vpack.c.bf16 (!%p1611_p5), %v1042_v44, %v1041_v43 }
 0x1e1   : > { %884 = vst [vmem:[#allocation2 + $0x58] sm:$0xff] %v852_v55  ;;  %900 = vst [vmem:[#allocation2 + $0xd8] sm:$0xff] %v868_v56  ;;  %v926_v47 = vld [vmem:[#allocation2 + $0x88] sm:$0xff] (!%p1611_p5)  ;;  %v2647_v49 = vrot.slane (!%p1611_p5), %v941_v46, %v949_v39  ;;  %v1025_v51 = vld [vmem:[#allocation9 + $0x40] sm:$0xff] (!%p1611_p5) }
 0x1e2   : > { %1710 = vmatpush3.bf16.msra.mxu0 (!%p1611_p5), %v1709_v38  ;;  %1773 = vmatpush3.bf16.msra.mxu1 (!%p1611_p5), %v1709_v38  ;;  %v1026_v52 = vld [vmem:[#allocation9 + $0x48] sm:$0xff] (!%p1611_p5)  ;;  %v1043_v53 = vld [vmem:[#allocation9 + $0xd0] sm:$0xff] (!%p1611_p5)  ;;  %v1044_v54 = vld [vmem:[#allocation9 + $0xd8] sm:$0xff] (!%p1611_p5) }
 0x1e3   : > { %v792_v61 = vpop.f32.mrb[12].mxu0  ;;  %v832_v62 = vpop.f32.mrb[12].mxu1  ;;  %908 = sbr.rel (%p1611_p5) target bundleno = 910 (0x38e), region = 68  ;;  %1712 = vmatprep.subr.bf16.mxu0 (!%p1611_p5), %v1711_v40  ;;  %1766 = vmatprep.subr.bf16.mxu1 (!%p1611_p5), %v1711_v40  ;;  %v954_v55 = vadd.f32 (!%p1611_p5), %v2647_v49, %v910_v45  ;;  %v970_v56 = vadd.f32 (!%p1611_p5), %v2647_v49, %v926_v47  ;;  %v914_v25 = vld [vmem:[#allocation2 + $0x28] sm:$0xff] (!%p1611_p5)  ;;  %v913_v35 = vld [vmem:[#allocation2 + $0x20] sm:$0xff] (!%p1611_p5)  ;;  %v916_v38 = vld [vmem:[#allocation2 + $0x38] sm:$0xff] (!%p1611_p5) }
 0x1e4   : > { %v853_v1 = vadd.f32 %v792_v61, %v420_v57  ;;  %v869_v2 = vadd.f32 %v832_v62, %v436_v58  ;;  %v794_v3 = vpop.f32.mrb[13].mxu0  ;;  %v834_v4 = vpop.f32.mrb[13].mxu1  ;;  %v1717_v57 = vpack.c.bf16 (!%p1611_p5), %v1026_v52, %v1025_v51  ;;  %v1027_v61 = vld [vmem:[#allocation9 + $0x50] sm:$0xff] (!%p1611_p5)  ;;  %v1028_v62 = vld [vmem:[#allocation9 + $0x58] sm:$0xff] (!%p1611_p5)  ;;  %v930_v26 = vld [vmem:[#allocation2 + $0xa8] sm:$0xff] (!%p1611_p5)  ;;  %v958_v34 = vadd.f32 (!%p1611_p5), %v2647_v49, %v914_v25 }
 0x1e5   : > { %v854_v7 = vadd.f32 %v794_v3, %v421_v59  ;;  %v870_v8 = vadd.f32 %v834_v4, %v437_v60  ;;  %v796_v9 = vpop.f32.mrb[14].mxu0  ;;  %v836_v10 = vpop.f32.mrb[14].mxu1  ;;  %v986_v58 = vmax.f32 (!%p1611_p5), %v954_v55, 0.0  ;;  %v1002_v59 = vmax.f32 (!%p1611_p5), %v970_v56, 0.0  ;;  %v1029_v4 = vld [vmem:[#allocation9 + $0x60] sm:$0xff] (!%p1611_p5)  ;;  %v932_v39 = vld [vmem:[#allocation2 + $0xb8] sm:$0xff] (!%p1611_p5) }
 0x1e6   : > { %885 = vst [vmem:[#allocation2 + $0x60] sm:$0xff] %v853_v1  ;;  %901 = vst [vmem:[#allocation2 + $0xe0] sm:$0xff] %v869_v2  ;;  %v855_v11 = vadd.f32 %v796_v9, %v422_v63  ;;  %v871_v12 = vadd.f32 %v836_v10, %v438_v0  ;;  %v798_v13 = vpop.f32.mrb[15].mxu0  ;;  %v838_v14 = vpop.f32.mrb[15].mxu1  ;;  %1714 = vmatpush3.bf16.msra.mxu0 (!%p1611_p5), %v1713_v48  ;;  %1774 = vmatpush3.bf16.msra.mxu1 (!%p1611_p5), %v1713_v48  ;;  %v1045_v63 = vld [vmem:[#allocation9 + $0xe0] sm:$0xff] (!%p1611_p5)  ;;  %v1046_v0 = vld [vmem:[#allocation9 + $0xe8] sm:$0xff] (!%p1611_p5) }
 0x1e7   : > { %886 = vst [vmem:[#allocation2 + $0x68] sm:$0xff] %v854_v7  ;;  %902 = vst [vmem:[#allocation2 + $0xe8] sm:$0xff] %v870_v8  ;;  %v856_v15 = vadd.f32 %v798_v13, %v423_v5  ;;  %v872_v16 = vadd.f32 %v838_v14, %v439_v6  ;;  %1716 = vmatprep.subr.bf16.mxu0 (!%p1611_p5), %v1715_v50  ;;  %1767 = vmatprep.subr.bf16.mxu1 (!%p1611_p5), %v1715_v50  ;;  %v945_v1 = vsub.s32 (!%p1611_p5), 0, %v2641_v32  ;;  %v1030_v5 = vld [vmem:[#allocation9 + $0x68] sm:$0xff] (!%p1611_p5)  ;;  %v1047_v6 = vld [vmem:[#allocation9 + $0xf0] sm:$0xff] (!%p1611_p5) }
 0x1e8   : > { %887 = vst [vmem:[#allocation2 + $0x70] sm:$0xff] %v855_v11  ;;  %903 = vst [vmem:[#allocation2 + $0xf0] sm:$0xff] %v871_v12  ;;  %v1719_v60 = vpack.c.bf16 (!%p1611_p5), %v1044_v54, %v1043_v53  ;;  %1120 = vmatprep.mubr.f32.mxu0 (!%p1611_p5), %v986_v58  ;;  %1160 = vmatprep.mubr.f32.mxu1 (!%p1611_p5), %v1002_v59  ;;  %v1721_v2 = vpack.c.bf16 (!%p1611_p5), %v1028_v62, %v1027_v61  ;;  %v1048_v7 = vld [vmem:[#allocation9 + $0xf8] sm:$0xff] (!%p1611_p5)  ;;  %v1031_v10 = vld [vmem:[#allocation9 + $0x70] sm:$0xff] (!%p1611_p5)  ;;  %v990_v44 = vmax.f32 (!%p1611_p5), %v958_v34, 0.0 }
 0x1e9   : > { %888 = vst [vmem:[#allocation2 + $0x78] sm:$0xff] %v856_v15  ;;  %904 = vst [vmem:[#allocation2 + $0xf8] sm:$0xff] %v872_v16  ;;  %v1723_v3 = vpack.c.bf16 (!%p1611_p5), %v1046_v0, %v1045_v63  ;;  %v2652_v8 = vrot.slane (!%p1611_p5), %v941_v46, %v945_v1  ;;  %v1725_v9 = vpack.c.bf16 (!%p1611_p5), %v1030_v5, %v1029_v4  ;;  %v909_v11 = vld [vmem:[#allocation2] sm:$0xff] (!%p1611_p5)  ;;  %v1032_v14 = vld [vmem:[#allocation9 + $0x78] sm:$0xff] (!%p1611_p5) }
 0x1ea   : > { %1718 = vmatpush3.bf16.msra.mxu0 %v1717_v57  ;;  %1775 = vmatpush3.bf16.msra.mxu1 %v1717_v57  ;;  %v925_v12 = vld [vmem:[#allocation2 + $0x80] sm:$0xff]  ;;  %v1727_v13 = vpack.c.bf16 %v1048_v7, %v1047_v6  ;;  %v912_v15 = vld [vmem:[#allocation2 + $0x18] sm:$0xff]  ;;  %v1729_v19 = vpack.c.bf16 %v1032_v14, %v1031_v10  ;;  %v974_v36 = vadd.f32 %v2647_v49, %v930_v26  ;;  %v915_v47 = vld [vmem:[#allocation2 + $0x30] sm:$0xff] }
 0x1eb   : > { %1720 = vmatprep.subr.bf16.mxu0 %v1719_v60  ;;  %1768 = vmatprep.subr.bf16.mxu1 %v1719_v60  ;;  %v928_v16 = vld [vmem:[#allocation2 + $0x98] sm:$0xff]  ;;  %v953_v17 = vadd.f32 %v2652_v8, %v909_v11  ;;  %v969_v18 = vadd.f32 %v2652_v8, %v925_v12  ;;  %v956_v21 = vadd.f32 %v2647_v49, %v912_v15  ;;  %v929_v37 = vld [vmem:[#allocation2 + $0xa0] sm:$0xff]  ;;  %v931_v50 = vld [vmem:[#allocation2 + $0xb0] sm:$0xff] }
 0x1ec   : > { %v972_v22 = vadd.f32 %v2647_v49, %v928_v16  ;;  %v955_v29 = vadd.f32 %v2652_v8, %v911_v23  ;;  %v971_v30 = vadd.f32 %v2652_v8, %v927_v24  ;;  %v957_v42 = vadd.f32 %v2652_v8, %v913_v35  ;;  %v918_v51 = vld [vmem:[#allocation2 + $0x48] sm:$0xff]  ;;  %v917_v60 = vld [vmem:[#allocation2 + $0x40] sm:$0xff]  ;;  %v920_v63 = vld [vmem:[#allocation2 + $0x58] sm:$0xff] }
 0x1ed   : > { %v985_v27 = vmax.f32 %v953_v17, 0.0  ;;  %v1001_v28 = vmax.f32 %v969_v18, 0.0  ;;  %v988_v31 = vmax.f32 %v956_v21, 0.0  ;;  %v973_v43 = vadd.f32 %v2652_v8, %v929_v37  ;;  %v934_v52 = vld [vmem:[#allocation2 + $0xc8] sm:$0xff]  ;;  %v933_v62 = vld [vmem:[#allocation2 + $0xc0] sm:$0xff]  ;;  %v936_v0 = vld [vmem:[#allocation2 + $0xd8] sm:$0xff] }
 0x1ee   : > { %1722 = vmatpush3.bf16.msra.mxu0 %v1721_v2  ;;  %1776 = vmatpush3.bf16.msra.mxu1 %v1721_v2  ;;  %v1004_v33 = vmax.f32 %v972_v22, 0.0  ;;  %v987_v40 = vmax.f32 %v955_v29, 0.0  ;;  %v1003_v41 = vmax.f32 %v971_v30, 0.0  ;;  %v960_v45 = vadd.f32 %v2647_v49, %v916_v38  ;;  %v919_v7 = vld [vmem:[#allocation2 + $0x50] sm:$0xff]  ;;  %v922_v12 = vld [vmem:[#allocation2 + $0x68] sm:$0xff]  ;;  %v921_v21 = vld [vmem:[#allocation2 + $0x60] sm:$0xff] }
 0x1ef   : > { %1724 = vmatprep.subr.bf16.mxu0 %v1723_v3  ;;  %1769 = vmatprep.subr.bf16.mxu1 %v1723_v3  ;;  %v1006_v46 = vmax.f32 %v974_v36, 0.0  ;;  %v976_v48 = vadd.f32 %v2647_v49, %v932_v39  ;;  %v989_v53 = vmax.f32 %v957_v42, 0.0  ;;  %v959_v54 = vadd.f32 %v2652_v8, %v915_v47  ;;  %v935_v11 = vld [vmem:[#allocation2 + $0xd0] sm:$0xff]  ;;  %v937_v24 = vld [vmem:[#allocation2 + $0xe0] sm:$0xff] }
 0x1f0   : > { %v1005_v55 = vmax.f32 %v973_v43, 0.0  ;;  %v975_v56 = vadd.f32 %v2652_v8, %v931_v50  ;;  %v992_v57 = vmax.f32 %v960_v45, 0.0  ;;  %v962_v58 = vadd.f32 %v2647_v49, %v918_v51  ;;  %v924_v25 = vld [vmem:[#allocation2 + $0x78] sm:$0xff]  ;;  %v923_v34 = vld [vmem:[#allocation2 + $0x70] sm:$0xff] }
 0x1f1   : > { %v1008_v59 = vmax.f32 %v976_v48, 0.0  ;;  %v978_v61 = vadd.f32 %v2647_v49, %v934_v52  ;;  %v991_v1 = vmax.f32 %v959_v54, 0.0  ;;  %v961_v2 = vadd.f32 %v2652_v8, %v917_v60  ;;  %v940_v26 = vld [vmem:[#allocation2 + $0xf8] sm:$0xff]  ;;  %v939_v37 = vld [vmem:[#allocation2 + $0xf0] sm:$0xff]  ;;  %v2687_v48 = vld [vmem:[%s2950_s7] ss:$0 sm:$0xff] }
 0x1f2   : > { %1726 = vmatpush3.bf16.msra.mxu0 %v1725_v9  ;;  %1777 = vmatpush3.bf16.msra.mxu1 %v1725_v9  ;;  %v1007_v3 = vmax.f32 %v975_v56, 0.0  ;;  %v977_v4 = vadd.f32 %v2652_v8, %v933_v62  ;;  %v994_v5 = vmax.f32 %v962_v58, 0.0  ;;  %v964_v6 = vadd.f32 %v2647_v49, %v920_v63  ;;  %v2694_v58 = vld [vmem:[%s2951_s24] ss:$0 sm:$0xff] }
 0x1f3   : > { %1728 = vmatprep.subr.bf16.mxu0 %v1727_v13  ;;  %1770 = vmatprep.subr.bf16.mxu1 %v1727_v13  ;;  %v1010_v9 = vmax.f32 %v978_v61, 0.0  ;;  %v980_v10 = vadd.f32 %v2647_v49, %v936_v0  ;;  %v938_v13 = vld [vmem:[#allocation2 + $0xe8] sm:$0xff]  ;;  %v993_v14 = vmax.f32 %v961_v2, 0.0  ;;  %v963_v15 = vadd.f32 %v2652_v8, %v919_v7 }
 0x1f4   : > { %v1009_v16 = vmax.f32 %v977_v4, 0.0  ;;  %v979_v17 = vadd.f32 %v2652_v8, %v935_v11  ;;  %v996_v18 = vmax.f32 %v964_v6, 0.0  ;;  %v982_v23 = vadd.f32 %v2647_v49, %v938_v13 }
 0x1f5   : > { %v1012_v22 = vmax.f32 %v980_v10, 0.0  ;;  %v981_v30 = vadd.f32 %v2652_v8, %v937_v24  ;;  %v984_v36 = vadd.f32 %v2647_v49, %v940_v26  ;;  %v967_v39 = vadd.f32 %v2652_v8, %v923_v34 }
 0x1f6   : > { %1730 = vmatpush3.bf16.msra.mxu0 %v1729_v19  ;;  %1778 = vmatpush3.bf16.msra.mxu1 %v1729_v19  ;;  %v966_v19 = vadd.f32 %v2647_v49, %v922_v12  ;;  %v1011_v29 = vmax.f32 %v979_v17, 0.0  ;;  %v1014_v35 = vmax.f32 %v982_v23, 0.0 }
 0x1f7   : > { %v1016_v43 = vmax.f32 %v984_v36, 0.0 }
 0x1f9   : > { %1121 = vmatmul.mubr.f32.vlgmr.msra.gmra.mrb[0].mxu0 %v985_v27  ;;  %1161 = vmatmul.mubr.f32.vlgmr.msra.gmra.mrb[0].mxu1 %v1001_v28  ;;  %v995_v27 = vmax.f32 %v963_v15, 0.0  ;;  %v965_v28 = vadd.f32 %v2652_v8, %v921_v21 }
 0x1fa   : > { %1125 = vmatprep.mubr.f32.mxu0 %v988_v31  ;;  %1165 = vmatprep.mubr.f32.mxu1 %v1004_v33  ;;  %v998_v31 = vmax.f32 %v966_v19, 0.0  ;;  %v968_v33 = vadd.f32 %v2647_v49, %v924_v25 }
 0x1fb   : > { %v997_v38 = vmax.f32 %v965_v28, 0.0 }
 0x1fc   : > { %v1000_v42 = vmax.f32 %v968_v33, 0.0 }
 0x1fd   : > { %1126 = vmatmul.mubr.f32.gmra.mrb[2].mxu0 %v987_v40  ;;  %1166 = vmatmul.mubr.f32.gmra.mrb[2].mxu1 %v1003_v41  ;;  %v1013_v40 = vmax.f32 %v981_v30, 0.0  ;;  %v983_v41 = vadd.f32 %v2652_v8, %v939_v37 }
 0x1fe   : > { %1130 = vmatprep.mubr.f32.mxu0 %v990_v44  ;;  %1170 = vmatprep.mubr.f32.mxu1 %v1006_v46  ;;  %v999_v44 = vmax.f32 %v967_v39, 0.0 }
 0x1ff   : > { %v1015_v45 = vmax.f32 %v983_v41, 0.0 }
 0x201   : > { %1131 = vmatmul.mubr.f32.gmra.mrb[4].mxu0 %v989_v53  ;;  %1171 = vmatmul.mubr.f32.gmra.mrb[4].mxu1 %v1005_v55 }
 0x202   : > { %1135 = vmatprep.mubr.f32.mxu0 %v992_v57  ;;  %1175 = vmatprep.mubr.f32.mxu1 %v1008_v59 }
 0x205   : > { %1136 = vmatmul.mubr.f32.gmra.mrb[6].mxu0 %v991_v1  ;;  %1176 = vmatmul.mubr.f32.gmra.mrb[6].mxu1 %v1007_v3 }
 0x206   : > { %1140 = vmatprep.mubr.f32.mxu0 %v994_v5  ;;  %1180 = vmatprep.mubr.f32.mxu1 %v1010_v9 }
 0x209   : > { %1141 = vmatmul.mubr.f32.gmra.mrb[8].mxu0 %v993_v14  ;;  %1181 = vmatmul.mubr.f32.gmra.mrb[8].mxu1 %v1009_v16 }
 0x20a   : > { %1145 = vmatprep.mubr.f32.mxu0 %v996_v18  ;;  %1185 = vmatprep.mubr.f32.mxu1 %v1012_v22 }
 0x20d   : > { %1146 = vmatmul.mubr.f32.gmra.mrb[10].mxu0 %v995_v27  ;;  %1186 = vmatmul.mubr.f32.gmra.mrb[10].mxu1 %v1011_v29 }
 0x20e   : > { %1150 = vmatprep.mubr.f32.mxu0 %v998_v31  ;;  %1190 = vmatprep.mubr.f32.mxu1 %v1014_v35 }
 0x211   : > { %1151 = vmatmul.mubr.f32.gmra.mrb[12].mxu0 %v997_v38  ;;  %1191 = vmatmul.mubr.f32.gmra.mrb[12].mxu1 %v1013_v40 }
 0x212   : > { %1155 = vmatprep.mubr.f32.mxu0 %v1000_v42  ;;  %1195 = vmatprep.mubr.f32.mxu1 %v1016_v43 }
 0x215   : > { %1156 = vmatmul.mubr.f32.gmra.mrb[14].mxu0 %v999_v44  ;;  %1196 = vmatmul.mubr.f32.gmra.mrb[14].mxu1 %v1015_v45 }
 0x2cc   : > { %v1651_v49 = vpop.f32.mrb[0].mxu0  ;;  %v1675_v46 = vpop.f32.mrb[0].mxu1 }
 0x2cd   : > { %v1652_v47 = vpop.f32.mrb[1].mxu0  ;;  %v1676_v8 = vpop.f32.mrb[1].mxu1 }
 0x2ce   : > { %v1653_v50 = vadd.f32 %v1652_v47, %v1651_v49  ;;  %v1677_v51 = vadd.f32 %v1676_v8, %v1675_v46 }
 0x2d0   : > { %v1163_v52 = vadd.f32 %v1677_v51, %v2687_v48  ;;  %v1654_v53 = vpop.f32.mrb[2].mxu0  ;;  %v1678_v54 = vpop.f32.mrb[2].mxu1  ;;  %v1123_v55 = vadd.f32 %v1653_v50, %v2687_v48 }
 0x2d1   : > { %v1655_v56 = vpop.f32.mrb[3].mxu0  ;;  %v1679_v57 = vpop.f32.mrb[3].mxu1 }
 0x2d2   : > { %v1209_v59 = vmax.f32 %v1163_v52, 0.0  ;;  %v1656_v60 = vadd.f32 %v1655_v56, %v1654_v53  ;;  %v1680_v61 = vadd.f32 %v1679_v57, %v1678_v54  ;;  %v1201_v62 = vmax.f32 %v1123_v55, 0.0 }
 0x2d4   : > { %v1128_v63 = vadd.f32 %v1656_v60, %v2687_v48  ;;  %v1657_v0 = vpop.f32.mrb[4].mxu0  ;;  %v1224_v1 = vmul.f32 %v2694_v58, %v1201_v62  ;;  %v1681_v2 = vpop.f32.mrb[4].mxu1  ;;  %v1168_v3 = vadd.f32 %v1680_v61, %v2687_v48  ;;  %v1232_v10 = vmul.f32 %v2694_v58, %v1209_v59 }
 0x2d5   : > { %v1658_v4 = vpop.f32.mrb[5].mxu0  ;;  %v1682_v5 = vpop.f32.mrb[5].mxu1 }
 0x2d6   : > { %v1659_v6 = vadd.f32 %v1658_v4, %v1657_v0  ;;  %1240 = vadd.xlane.f32.xlu0 %v1224_v1  ;;  %v1683_v7 = vadd.f32 %v1682_v5, %v1681_v2  ;;  %v1210_v9 = vmax.f32 %v1168_v3, 0.0  ;;  %v1202_v11 = vmax.f32 %v1128_v63, 0.0 }
 0x2d8   : > { %v1133_v12 = vadd.f32 %v1659_v6, %v2687_v48  ;;  %v1660_v13 = vpop.f32.mrb[6].mxu0  ;;  %v1173_v14 = vadd.f32 %v1683_v7, %v2687_v48  ;;  %v1233_v15 = vmul.f32 %v2694_v58, %v1210_v9  ;;  %v1684_v16 = vpop.f32.mrb[6].mxu1  ;;  %v1225_v28 = vmul.f32 %v2694_v58, %v1202_v11 }
 0x2d9   : > { %v1661_v17 = vpop.f32.mrb[7].mxu0  ;;  %v1685_v18 = vpop.f32.mrb[7].mxu1 }
 0x2da   : > { %v1203_v19 = vmax.f32 %v1133_v12, 0.0  ;;  %v1662_v21 = vadd.f32 %v1661_v17, %v1660_v13  ;;  %v1211_v22 = vmax.f32 %v1173_v14, 0.0  ;;  %1258 = vadd.xlane.f32.xlu1 %v1233_v15  ;;  %1256 = vadd.xlane.f32.xlu0 %v1232_v10  ;;  %v1686_v23 = vadd.f32 %v1685_v18, %v1684_v16 }
 0x2dc   : > { %v1138_v24 = vadd.f32 %v1662_v21, %v2687_v48  ;;  %v1663_v25 = vpop.f32.mrb[8].mxu0  ;;  %v1178_v26 = vadd.f32 %v1686_v23, %v2687_v48  ;;  %v1226_v27 = vmul.f32 %v2694_v58, %v1203_v19  ;;  %v1687_v29 = vpop.f32.mrb[8].mxu1  ;;  %v1234_v31 = vmul.f32 %v2694_v58, %v1211_v22 }
 0x2dd   : > { %v1664_v30 = vpop.f32.mrb[9].mxu0  ;;  %v1688_v33 = vpop.f32.mrb[9].mxu1 }
 0x2de   : > { %v1204_v34 = vmax.f32 %v1138_v24, 0.0  ;;  %v1665_v35 = vadd.f32 %v1664_v30, %v1663_v25  ;;  %v1212_v36 = vmax.f32 %v1178_v26, 0.0  ;;  %1244 = vadd.xlane.f32.xlu1 %v1226_v27  ;;  %1242 = vadd.xlane.f32.xlu0 %v1225_v28  ;;  %v1689_v37 = vadd.f32 %v1688_v33, %v1687_v29 }
 0x2df   : > { %v2729_v25 = vand.u32 127, %v943_v20 }
 0x2e0   : > { %v1143_v38 = vadd.f32 %v1665_v35, %v2687_v48  ;;  %v1666_v39 = vpop.f32.mrb[10].mxu0  ;;  %v1227_v40 = vmul.f32 %v2694_v58, %v1204_v34  ;;  %v1690_v41 = vpop.f32.mrb[10].mxu1  ;;  %v1235_v49 = vmul.f32 %v2694_v58, %v1212_v36  ;;  %v1183_v57 = vadd.f32 %v1689_v37, %v2687_v48 }
 0x2e1   : > { %v1667_v42 = vpop.f32.mrb[11].mxu0  ;;  %v1691_v43 = vpop.f32.mrb[11].mxu1  ;;  %v1312_v27 = vadd.s32 4294967288, %v2729_v25  ;;  %v2733_v29 = vadd.s32 4294967224, %v2729_v25  ;;  %v1319_v30 = vadd.s32 4294967280, %v2729_v25  ;;  %v1326_v35 = vadd.s32 4294967272, %v2729_v25 }
 0x2e2   : > { %v1205_v44 = vmax.f32 %v1143_v38, 0.0  ;;  %v1668_v45 = vadd.f32 %v1667_v42, %v1666_v39  ;;  %1246 = vadd.xlane.f32.xlu1 %v1227_v40  ;;  %1260 = vadd.xlane.f32.xlu0 %v1234_v31  ;;  %v1692_v46 = vadd.f32 %v1691_v43, %v1690_v41  ;;  %v1213_v5 = vmax.f32 %v1183_v57, 0.0 }
 0x2e3   : > { %v2739_v31 = vstv %s1272_s21  ;;  %v1315_v34 = vsub.s32 %v1312_v27, %v2641_v32  ;;  %v1310_v36 = vsub.s32 %v2729_v25, %v2641_v32  ;;  %v1371_v37 = vsub.s32 %v2733_v29, %v2641_v32 }
 0x2e4   : > { %v1148_v47 = vadd.f32 %v1668_v45, %v2687_v48  ;;  %v1669_v8 = vpop.f32.mrb[12].mxu0  ;;  %v1228_v50 = vmul.f32 %v2694_v58, %v1205_v44  ;;  %v1693_v51 = vpop.f32.mrb[12].mxu1  ;;  %v1188_v6 = vadd.f32 %v1692_v46, %v2687_v48  ;;  %v1236_v15 = vmul.f32 %v2694_v58, %v1213_v5 }
 0x2e5   : > { %v1670_v52 = vpop.f32.mrb[13].mxu0  ;;  %v1694_v53 = vpop.f32.mrb[13].mxu1  ;;  %v2749_v38 = vadd.s32 4294967216, %v2729_v25  ;;  %v1333_v39 = vadd.s32 4294967264, %v2729_v25  ;;  %v1322_v42 = vsub.s32 %v1319_v30, %v2641_v32  ;;  %v1340_v44 = vadd.s32 4294967256, %v2729_v25 }
 0x2e6   : > { %v1206_v54 = vmax.f32 %v1148_v47, 0.0  ;;  %v1671_v55 = vadd.f32 %v1670_v52, %v1669_v8  ;;  %1262 = vadd.xlane.f32.xlu1 %v1235_v49  ;;  %1248 = vadd.xlane.f32.xlu0 %v1228_v50  ;;  %v1695_v56 = vadd.f32 %v1694_v53, %v1693_v51  ;;  %v1214_v13 = vmax.f32 %v1188_v6, 0.0 }
 0x2e7   : > { %v2759_v49 = vadd.s32 4294967208, %v2729_v25  ;;  %v1347_v47 = vadd.s32 4294967248, %v2729_v25  ;;  %v1329_v50 = vsub.s32 %v1326_v35, %v2641_v32  ;;  %v1378_v52 = vsub.s32 %v2749_v38, %v2641_v32 }
 0x2e8   : > { %v1153_v59 = vadd.f32 %v1671_v55, %v2687_v48  ;;  %v1672_v60 = vpop.f32.mrb[14].mxu0  ;;  %v1229_v61 = vmul.f32 %v2694_v58, %v1206_v54  ;;  %v1696_v62 = vpop.f32.mrb[14].mxu1  ;;  %v1193_v3 = vadd.f32 %v1695_v56, %v2687_v48  ;;  %v1237_v18 = vmul.f32 %v2694_v58, %v1214_v13 }
 0x2e9   : > { %v1673_v63 = vpop.f32.mrb[15].mxu0  ;;  %v1697_v0 = vpop.f32.mrb[15].mxu1  ;;  %v1336_v53 = vsub.s32 %v1333_v39, %v2641_v32  ;;  %v1343_v56 = vsub.s32 %v1340_v44, %v2641_v32  ;;  %v1396_v5 = vadd.s32 4294967192, %v2729_v25 }
 0x2ea   : > { %v1207_v1 = vmax.f32 %v1153_v59, 0.0  ;;  %v1674_v2 = vadd.f32 %v1673_v63, %v1672_v60  ;;  %1250 = vadd.xlane.f32.xlu1 %v1229_v61  ;;  %v1698_v4 = vadd.f32 %v1697_v0, %v1696_v62  ;;  %v1215_v11 = vmax.f32 %v1193_v3, 0.0 }
 0x2eb   : > { %v1354_v59 = vadd.s32 4294967240, %v2729_v25  ;;  %v1385_v61 = vsub.s32 %v2759_v49, %v2641_v32  ;;  %v1350_v62 = vsub.s32 %v1347_v47, %v2641_v32 }
 0x2ec   : > { %v1158_v7 = vadd.f32 %v1674_v2, %v2687_v48  ;;  %v1230_v9 = vmul.f32 %v2694_v58, %v1207_v1  ;;  %v1198_v12 = vadd.f32 %v1698_v4, %v2687_v48  ;;  %v1238_v17 = vmul.f32 %v2694_v58, %v1215_v11 }
 0x2ed   : > { %v1389_v4 = vadd.s32 4294967200, %v2729_v25 }
 0x2ee   : > { %v1208_v10 = vmax.f32 %v1158_v7, 0.0  ;;  %1252 = vadd.xlane.f32.xlu0 %v1230_v9  ;;  %v1216_v16 = vmax.f32 %v1198_v12, 0.0  ;;  %v1357_v7 = vsub.s32 %v1354_v59, %v2641_v32 }
 0x2f0   : > { %v1231_v14 = vmul.f32 %v2694_v58, %v1208_v10  ;;  %v1239_v19 = vmul.f32 %v2694_v58, %v1216_v16  ;;  %v2736_v58 = vadd.s32 4294967232, %v2729_v25 }
 0x2f2   : > { %1254 = vadd.xlane.f32.xlu1 %v1231_v14  ;;  %1264 = vadd.xlane.f32.xlu0 %v1236_v15  ;;  %v1364_v41 = vsub.s32 %v2736_v58, %v2641_v32  ;;  %v1403_v14 = vadd.s32 4294967184, %v2729_v25 }
 0x2f6   : > { %1266 = vadd.xlane.f32.xlu1 %v1237_v18  ;;  %1268 = vadd.xlane.f32.xlu0 %v1238_v17 }
 0x2fa   : > { %1270 = vadd.xlane.f32.xlu1 %v1239_v19 }
 0x363   : > { %v1241_v21 = vpop.xlane.xlu0 %1240 }
 0x364   : > { %v1274_v40 = vadd.f32 %v2739_v31, %v1241_v21  ;;  %v1392_v21 = vsub.s32 %v1389_v4, %v2641_v32 }
 0x366   : > { %v1311_v55 = vrot.slane %v1274_v40, %v1310_v36 }
 0x367   : > { %v2726_v22 = vpop.xlane.xlu1 %1258  ;;  %v1257_v48 = vpop.xlane.xlu0 %1256 }
 0x368   : > { %v1282_v9 = vadd.f32 %v2739_v31, %v1257_v48  ;;  %v1283_v15 = vadd.f32 %v2739_v31, %v2726_v22  ;;  %v1399_v48 = vsub.s32 %v1396_v5, %v2641_v32  ;;  %v1410_v22 = vadd.s32 4294967176, %v2729_v25 }
 0x36a   : > { %v1365_v27 = vrot.slane %v1282_v9, %v1364_v41  ;;  %v1372_v35 = vrot.slane %v1283_v15, %v1371_v37 }
 0x36b   : > { %v1245_v23 = vpop.xlane.xlu1 %1244  ;;  %v1243_v24 = vpop.xlane.xlu0 %1242 }
 0x36c   : > { %v1275_v20 = vadd.f32 %v2739_v31, %v1243_v24  ;;  %v1276_v45 = vadd.f32 %v2739_v31, %v1245_v23 }
 0x36e   : > { %v1316_v8 = vrot.slane %v1275_v20, %v1315_v34  ;;  %v1323_v60 = vrot.slane %v1276_v45, %v1322_v42  ;;  %v1413_v42 = vsub.s32 %v1410_v22, %v2641_v32 }
 0x36f   : > { %v1247_v26 = vpop.xlane.xlu1 %1246  ;;  %v1261_v28 = vpop.xlane.xlu0 %1260 }
 0x370   : > { %v1277_v51 = vadd.f32 %v2739_v31, %v1247_v26  ;;  %v1318_v0 = vsel %vm1317_vm0, %v1316_v8, %v1311_v55  ;;  %v1284_v18 = vadd.f32 %v2739_v31, %v1261_v28  ;;  %v1406_v28 = vsub.s32 %v1403_v14, %v2641_v32 }
 0x371   : > { %v1325_v10 = vsel %vm1324_vm1, %v1323_v60, %v1318_v0 }
 0x372   : > { %v1330_v1 = vrot.slane %v1277_v51, %v1329_v50  ;;  %v1379_v38 = vrot.slane %v1284_v18, %v1378_v52 }
 0x373   : > { %v1263_v33 = vpop.xlane.xlu1 %1262  ;;  %v1249_v43 = vpop.xlane.xlu0 %1248 }
 0x374   : > { %v1278_v54 = vadd.f32 %v2739_v31, %v1249_v43  ;;  %v1332_v16 = vsel %vm1331_vm2, %v1330_v1, %v1325_v10  ;;  %v1285_v23 = vadd.f32 %v2739_v31, %v1263_v33 }
 0x376   : > { %v1337_v3 = vrot.slane %v1278_v54, %v1336_v53  ;;  %v1386_v40 = vrot.slane %v1285_v23, %v1385_v61 }
 0x377   : > { %v1251_v46 = vpop.xlane.xlu1 %1250 }
 0x378   : > { %v1279_v57 = vadd.f32 %v2739_v31, %v1251_v46  ;;  %v1339_v19 = vsel %vm1338_vm3, %v1337_v3, %v1332_v16 }
 0x37a   : > { %v1344_v6 = vrot.slane %v1279_v57, %v1343_v56 }
 0x37b   : > { %v1253_v63 = vpop.xlane.xlu0 %1252 }
 0x37c   : > { %v1280_v2 = vadd.f32 %v2739_v31, %v1253_v63  ;;  %v1346_v24 = vsel %vm1345_vm4, %v1344_v6, %v1339_v19 }
 0x37e   : > { %v1351_v11 = vrot.slane %v1280_v2, %v1350_v62 }
 0x37f   : > { %v1255_v12 = vpop.xlane.xlu1 %1254  ;;  %v1265_v13 = vpop.xlane.xlu0 %1264 }
 0x380   : > { %v1281_v17 = vadd.f32 %v2739_v31, %v1255_v12  ;;  %v1353_v58 = vsel %vm1352_vm5, %v1351_v11, %v1346_v24  ;;  %v1286_v30 = vadd.f32 %v2739_v31, %v1265_v13 }
 0x382   : > { %v1358_v26 = vrot.slane %v1281_v17, %v1357_v7  ;;  %v1393_v37 = vrot.slane %v1286_v30, %v1392_v21 }
 0x383   : > { %v1267_v34 = vpop.xlane.xlu1 %1266  ;;  %v1269_v20 = vpop.xlane.xlu0 %1268 }
 0x384   : > { %v1360_v33 = vsel %vm1359_vm6, %v1358_v26, %v1353_v58  ;;  %v1287_v36 = vadd.f32 %v2739_v31, %v1267_v34  ;;  %v1288_v39 = vadd.f32 %v2739_v31, %v1269_v20 }
 0x385   : > { %v1367_v25 = vsel %vm1366_vm7, %v1365_v27, %v1360_v33 }
 0x386   : > { %v1374_v41 = vsel %vm1373_vm8, %v1372_v35, %v1367_v25  ;;  %v1400_v45 = vrot.slane %v1287_v36, %v1399_v48  ;;  %v1407_v47 = vrot.slane %v1288_v39, %v1406_v28 }
 0x387   : > { %v1381_v29 = vsel %vm1380_vm9, %v1379_v38, %v1374_v41  ;;  %v1271_v43 = vpop.xlane.xlu1 %1270 }
 0x388   : > { %v1388_v44 = vsel %vm1387_vm10, %v1386_v40, %v1381_v29  ;;  %v1289_v49 = vadd.f32 %v2739_v31, %v1271_v43 }
 0x389   : > { %v1395_v46 = vsel %vm1394_vm11, %v1393_v37, %v1388_v44 }
 0x38a   : > { %v1402_v8 = vsel %vm1401_vm12, %v1400_v45, %v1395_v46  ;;  %v1414_v50 = vrot.slane %v1289_v49, %v1413_v42 }
 0x38b   : > { %v1409_v51 = vsel %vm1408_vm13, %v1407_v47, %v1402_v8 }
 0x38c   : > { %v1416_v52 = vsel %vm1415_vm14, %v1414_v50, %v1409_v51 }
 0x38d   : > { %1418 = vst [vmem:[%s2588_s17] sm:$0x1] %v1416_v52 }
 0x38e PF: > { %s2952_s29 = sld [smem:[#allocation17_spill]]  ;;  %s2953_s14 = sld [smem:[#allocation19_spill]] }
 0x38f   : > { %s2954_s4 = sld [smem:[#allocation28_spill]]  ;;  %s1432_s20 = sshll.u32 %s2588_s17, 4  ;;  %s1433_s20 = int_to_ptr.vmem [resolvable:$true] %s1432_s20 }
 0x390   : > { %s1420_s3 = scalar_lea.sflag [#allocation6], %s367_s19  ;;  %s2086_s18 = scalar_lea.vmem %s1433_s20, 16 }
 0x391   : > { %p2087_p2 = scmp.ne.s32.totalorder %s1433_s20, %s2086_s18  ;;  %s2249_s5 = smov [#allocation10]  }
 0x392   : > { %s2090_s2 = sshll.u32 %s2249_s5, 4  ;;  %s2091_s2 = int_to_ptr.vmem [resolvable:$false] %s2090_s2 }
 0x393   : > { %s2092_s7 = scalar_lea.vmem %s2091_s2, 32  ;;  %p2093_p4 = scmp.lt.s32.totalorder %s1433_s20, %s2091_s2 }
 0x394   : > { %s1614_s9 = sshll.u32 %s2952_s29, 4  ;;  %p2955_p10 = scmp.ne.s32.totalorder %s2953_s14, 0 }
 0x395   : > { %s2811_s16 = scalar_lea.hbm %s2954_s4, %s1614_s9  ;;  %p2094_p8 = scmp.lt.s32.totalorder %s2092_s7, %s2086_s18 }
 0x396   : > { %p2088_p7 = pnand %p2087_p2, %p2955_p10 }
 0x397   : > { %p2095_p12 = por %p2094_p8, %p2093_p4 }
 0x398   : > { %p2089_p11 = pneg %p2088_p7 }
 0x39a   : > { %p2096_p13 = pnand %p2095_p12, %p2089_p11 }
 0x39c   : > { %2099 = shalt.err (!%p2096_p13)
}
 0x39d   : > { %s2100_s19 = scalar_lea.hbm %s2811_s16, 16  ;;  %s2104_s26 = scalar_lea.hbm %s2954_s4, 48 }
 0x39e   : > { %p2101_p6 = scmp.ne.s32.totalorder %s2811_s16, %s2100_s19  ;;  %p2105_p3 = scmp.lt.u32.totalorder %s2811_s16, %s2954_s4 }
 0x39f   : > { %p2106_p9 = scmp.lt.u32.totalorder %s2104_s26, %s2100_s19  ;;  %p2108_p2 = scmp.lt.u32.totalorder %s2100_s19, %s2811_s16 }
 0x3a0   : > { %p2102_p0 = pnand %p2101_p6, %p2955_p10 }
 0x3a1   : > { %p2107_p5 = por %p2106_p9, %p2105_p3 }
 0x3a2   : > { %p2103_p1 = pneg %p2102_p0 }
 0x3a3   : > { %p2109_p7 = por %p2108_p2, %p2107_p5 }
 0x3a5   : > { %p2110_p11 = pnand %p2109_p7, %p2103_p1 }
 0x3a7   : > { %2113 = shalt.err (!%p2110_p11)
}
 0x3a8   : > { %1788 = dma.vmem_to_hbm [thread:$0]  (%p2955_p10), %s1433_s20, 16, %s2811_s16, %s1420_s3  }
 0x3a9 PF: > { %s2956_s29 = sld [smem:[#allocation15_spill]]  ;;  %s2957_s9 = sld [smem:[#allocation20_spill]] }
 0x3aa   : > { %p1808_p4 = scmp.ge.s32.totalorder %s2240_s15, 2 }
 0x3af   : > { %s1444_s23 = sand.u32 1, %s2956_s29   ;;  %p2958_p8 = scmp.ne.s32.totalorder %s2957_s9, 0 }
 0x3b0   : > { %s1445_s25 = scalar_lea.sflag [#allocation6], %s1444_s23 }
 0x3b1   : > { %p1802_p12 = pnand %p1808_p4, %p2958_p8 }
 0x3b3   : > { %2183 = dma.done.wait (!%p1802_p12), %s1445_s25, 16  }
 0x3b4   : > { %2185 = vsyncadd (!%p1802_p12), %s1445_s25, 4294967280  ;;  %s27_s15 = sadd.s32 1, %s2240_s15   ;;  %s2960_s14 = sld [smem:[#allocation18_spill]] }
 0x3b5   : > { %p2838_p13 = scmp.ge.s32.totalorder %s27_s15, 11   ;;  %s2961_s16 = sld [smem:[#allocation21_spill]] }
 0x3b6   : > { %s2962_s20 = sld [smem:[#allocation22_spill]]  ;;  %s2963_s26 = smov %s2192_s27 }
 0x3b7   : > { %s2964_s27 = smov %s2196_s28  ;;  %s2965_s28 = smov %s2456_s22 }
 0x3b8   : > { %s2966_s29 = smov %s2204_s30  ;;  %s2967_s30 = smov %s2208_s8 }
 0x3b9   : > { %s2968_s8 = smov %s2514_s11  ;;  %s2969_s9 = smov %s2216_s6 }
 0x3ba   : > { %s2970_s6 = smov %s2220_s10  ;;  %s2971_s10 = smov %s2459_s12 }
 0x3bb   : > { %s2972_s11 = smov %s2232_s13  ;;  %s2973_s12 = smov %s2960_s14 }
 0x3bc   : > { %s2974_s13 = smov %s2961_s16  ;;  %s2975_s14 = smov %s2962_s20 }
 0x3bd   :  { %26 = sbr.rel (!%p2838_p13) target bundleno = 20 (0x14), region = 118 }
 0x3c4   :  { %1449 = vsyncpa [#allocation5], 1 }
 0x3c5   :  { %1451 = vsyncpa [#allocation5 + $0x1], 1 }
 0x3c6   :  { %1452 = vsyncpa [#allocation8], 1 }
 0x3c7   :  { %1454 = vsyncpa [#allocation8 + $0x1], 1 }
 0x3c8   :  { %1455 = vsyncpa [#allocation6], 1 }
 0x3c9   :  { %1457 = vsyncpa [#allocation6 + $0x1], 1 }

</bundles_post_ra>
